<compile_context>
chip_gen: v7x
topology: tpu7x:2x2x1
jax: 0.10.0
libtpu: 0.0.40
codegen_flags: <defaults>
</compile_context>

<pallas_src>
import functools

import jax
import jax.numpy as jnp
from jax.experimental import pallas as pl
from jax.experimental.pallas import tpu as pltpu


# ----------------------------------------------------------------------------
# Pallas kernel: per-edge MLP -> attention -> per-target K-sum -> output head
# ----------------------------------------------------------------------------
def _interp_kernel(x_ref,
                   w1_ref, b1_ref,
                   w2_ref, b2_ref,
                   w3_ref, b3_ref,
                   wqv_ref, bqv_ref,
                   w8_ref, b8_ref,
                   out_ref,
                   *, K: int, latent: int):
    """x_ref: (T*K, latent+6) bf16 edge features for T targets (K rows/target).

    MXU operands are bf16 with f32 accumulation; every elementwise / softmax /
    reduction step stays in f32.
    """
    bf16 = jnp.bfloat16

    def mm(a, w_ref):
        return jnp.dot(a.astype(bf16), w_ref[...],
                       preferred_element_type=jnp.float32)

    x = x_ref[...]                                              # (T*K, Fin) bf16

    # fc1 / fc2 / fc3 + ReLU
    h = jnp.maximum(mm(x, w1_ref) + b1_ref[...], 0.0)
    h = jnp.maximum(mm(h, w2_ref) + b2_ref[...], 0.0)
    h = jnp.maximum(mm(h, w3_ref) + b3_ref[...], 0.0)

    # fc_query | fc_value fused into one lane-dense MXU pass, then sliced.
    qv = mm(h, wqv_ref) + bqv_ref[...]                          # (T*K, 64+latent)
    q = qv[:, :64]
    v = qv[:, 64:64 + latent]

    # attention = softmax(query, dim=-1).mean(dim=1), exactly as the PyTorch
    # module writes it (softmax and mean both over the 64-wide query axis):
    #   mean_j softmax(q)_j = (sum_j exp(q_j - max)) * recip(sum) * (1/64)
    qm = q - jnp.max(q, axis=-1, keepdims=True)
    eq = jnp.exp(qm)                                            # EUP
    s = jnp.sum(eq, axis=-1, keepdims=True)                     # XLU reduce
    att = (s * pl.reciprocal(s, approx=True)) * (1.0 / 64.0)    # (T*K, 1)

    prod = att * v                                              # (T*K, latent) f32

    # Sum over the K neighbours of each target: cheap sublane reduction
    # (replaces the old quadratic selector-matmul).
    TK = prod.shape[0]
    T = TK // K
    xs = prod.reshape(T, K, latent).sum(axis=1)                 # (T, latent)

    # fc8 output head; write transposed so the output block is lane-dense
    # (last dim = T) instead of 4-lane masked stores.
    pred = mm(xs, w8_ref) + b8_ref[...]                         # (T, out_channels)
    out_ref[...] = pred.T.astype(out_ref.dtype)                 # (out_channels, T)


def interp_attention_forward(x_in, params, *, n_target, K, latent_size,
                             out_channels, targets_per_tile=256):
    """x_in: (n_target*K, latent_size+6) edge features (K rows grouped per target)."""
    E, Fin = x_in.shape
    assert E == n_target * K

    if n_target <= targets_per_tile:
        # Single grid step: every block equals the full (padded) array, so the
        # (8,128) divisibility rule is satisfied trivially.  Round the target
        # count to a sublane multiple only — avoids padding a tiny decode up
        # to 256 targets (16x wasted MXU/HBM work).
        T = max(8, ((n_target + 7) // 8) * 8)
    else:
        assert targets_per_tile % 128 == 0, \
            "targets_per_tile must be a multiple of 128 for the tiled path"
        T = targets_per_tile

    grid = pl.cdiv(n_target, T)
    n_pad = grid * T

    # Dominant HBM stream -> bf16; pad the target dim up to a tile multiple
    # (padded targets produce garbage rows that are sliced off at the end).
    x_bf16 = x_in.astype(jnp.bfloat16)
    pad_rows = n_pad * K - E
    if pad_rows:
        x_bf16 = jnp.pad(x_bf16, ((0, pad_rows), (0, 0)))

    bf16 = jnp.bfloat16
    w1 = params['w1'].astype(bf16)
    w2 = params['w2'].astype(bf16)
    w3 = params['w3'].astype(bf16)
    wqv = jnp.concatenate([params['wq'], params['wv']], axis=1).astype(bf16)
    bqv = jnp.concatenate([params['bq'], params['bv']], axis=1)
    w8 = params['w8'].astype(bf16)
    weights = (w1, params['b1'], w2, params['b2'], w3, params['b3'],
               wqv, bqv, w8, params['b8'])

    def const_spec(a):
        zeros = (0,) * a.ndim
        return pl.BlockSpec(a.shape, lambda i: zeros)   # VMEM-resident constants

    grid_spec = pltpu.PrefetchScalarGridSpec(
        num_scalar_prefetch=0,
        grid=(grid,),
        in_specs=[pl.BlockSpec((T * K, Fin), lambda i: (i, 0))]
                 + [const_spec(w) for w in weights],
        out_specs=pl.BlockSpec((out_channels, T), lambda i: (0, i)),
    )

    # VMEM budget note (v7x): 2 input buffers * T*K*Fin*2B (~0.6 MiB at
    # T=256,K=16,Fin=38) + ~T*K*(64+latent)*4B f32 intermediates (~3 MiB)
    # stays well under the 32 MiB default scoped limit; no explicit
    # vmem_limit_bytes needed.
    # TODO(synk): if xprof shows the input DMA exposed on v5e/v6e, add
    # pipeline_mode=pl.Buffered(3) to the x_in BlockSpec.
    out_t = pl.pallas_call(
        functools.partial(_interp_kernel, K=K, latent=latent_size),
        out_shape=jax.ShapeDtypeStruct((out_channels, n_pad), jnp.float32),
        grid_spec=grid_spec,
        compiler_params=pltpu.CompilerParams(
            dimension_semantics=("parallel",)),
    )(x_bf16, *weights)

    return out_t.T[:n_target]                                   # (n_target, out_channels)


# ----------------------------------------------------------------------------
# Plain-JAX glue: knn + gather/concat (data-dependent indexing, not the hot path)
# TODO(synk): fuse the latents/dirs gather into the kernel via scalar-prefetched
#             KNN indices (PrefetchScalarGridSpec) to avoid the extra HBM
#             round-trip of the edge matrix; kept in JAX glue here for
#             robustness (dynamic row gather has no clean BlockSpec form).
# ----------------------------------------------------------------------------
def knn_batched(pos_source, pos_target, batch_source, batch_target, K):
    """For each target point, indices of its K nearest source points in the
    same batch. Returns (N_target, K)."""
    d2 = jnp.sum((pos_target[:, None, :] - pos_source[None, :, :]) ** 2, axis=-1)
    same_batch = batch_target[:, None] == batch_source[None, :]
    d2 = jnp.where(same_batch, d2, jnp.inf)
    _, idx = jax.lax.top_k(-d2, K)          # nearest first
    return idx


def build_edge_features(pos, latents, dirs, pos_non_manifold, K):
    pos_source = pos[:, 1:]
    pos_target = pos_non_manifold[:, 1:]
    batch_source = pos[:, 0].astype(jnp.int32)
    batch_target = pos_non_manifold[:, 0].astype(jnp.int32)
    dirs3 = dirs[:, 1:]

    col = knn_batched(pos_source, pos_target, batch_source, batch_target, K)
    n_target = pos_target.shape[0]
    row = jnp.broadcast_to(jnp.arange(n_target)[:, None], (n_target, K))

    col_flat = col.reshape(-1)
    row_flat = row.reshape(-1)

    rel_pos = pos_target[row_flat] - pos_source[col_flat]            # (Nt*K, 3)
    x_in = jnp.concatenate(
        [latents[col_flat], rel_pos, dirs3[col_flat]], axis=1)       # (Nt*K, L+6)
    return x_in, n_target


# ----------------------------------------------------------------------------
# Deterministic parameter init (mimics nn.Linear uniform init); weights are
# stored transposed, i.e. shape (in_features, out_features).
# ----------------------------------------------------------------------------
def init_params(key, latent_size, out_channels):
    def linear(k, fan_in, fan_out):
        kw, kb = jax.random.split(k)
        bound = 1.0 / jnp.sqrt(fan_in)
        w = jax.random.uniform(kw, (fan_in, fan_out), jnp.float32, -bound, bound)
        b = jax.random.uniform(kb, (1, fan_out), jnp.float32, -bound, bound)
        return w, b

    ks = jax.random.split(key, 6)
    p = {}
    p['w1'], p['b1'] = linear(ks[0], latent_size + 6, latent_size)
    p['w2'], p['b2'] = linear(ks[1], latent_size, latent_size)
    p['w3'], p['b3'] = linear(ks[2], latent_size, latent_size)
    p['wq'], p['bq'] = linear(ks[3], latent_size, 64)
    p['wv'], p['bv'] = linear(ks[4], latent_size, latent_size)
    p['w8'], p['b8'] = linear(ks[5], latent_size, out_channels)
    return p


# Pure-JAX reference of the module's forward (post-knn), mirroring the kernel's
# bf16 MXU operands / f32 accumulation so the comparison is apples-to-apples.
def ref_forward(x_in, params, n_target, K, latent_size):
    bf16 = jnp.bfloat16

    def mm(a, w):
        return jnp.dot(a.astype(bf16), w.astype(bf16),
                       preferred_element_type=jnp.float32)

    h = jax.nn.relu(mm(x_in, params['w1']) + params['b1'])
    h = jax.nn.relu(mm(h, params['w2']) + params['b2'])
    h = jax.nn.relu(mm(h, params['w3']) + params['b3'])
    q = mm(h, params['wq']) + params['bq']
    v = mm(h, params['wv']) + params['bv']
    att = jax.nn.softmax(q, axis=-1).mean(axis=1).reshape(-1, 1)
    xs = (att * v).reshape(n_target, K, latent_size).sum(axis=1)
    return mm(xs, params['w8']) + params['b8']


if __name__ == "__main__":
    latent_size = 32
    out_channels = 4
    K = 16
    n_source = 64      # manifold points (with latents)
    n_target = 16      # non-manifold query points
    batch = 2

    key = jax.random.PRNGKey(0)
    k_pos, k_lat, k_dir, k_tgt, k_par = jax.random.split(key, 5)

    # batch-id column + xyz
    bsrc = jnp.repeat(jnp.arange(batch), n_source // batch).astype(jnp.float32)[:, None]
    btgt = jnp.repeat(jnp.arange(batch), n_target // batch).astype(jnp.float32)[:, None]
    pos = jnp.concatenate([bsrc, jax.random.normal(k_pos, (n_source, 3))], axis=1)
    pos_non_manifold = jnp.concatenate(
        [btgt, jax.random.normal(k_tgt, (n_target, 3))], axis=1)
    latents = jax.random.normal(k_lat, (n_source, latent_size))
    dirs = jnp.concatenate([bsrc, jax.random.normal(k_dir, (n_source, 3))], axis=1)

    params = init_params(k_par, latent_size, out_channels)

    # Glue: knn + gather + concat (data-dependent indexing).
    x_in, nt = build_edge_features(pos, latents, dirs, pos_non_manifold, K)

    # Hot path in Pallas.
    pred = interp_attention_forward(
        x_in, params, n_target=nt, K=K, latent_size=latent_size,
        out_channels=out_channels, targets_per_tile=256)
    pred = jax.block_until_ready(pred)

    # Verify against pure-JAX reference of the module math.
    ref = ref_forward(x_in, params, nt, K, latent_size)
    assert pred.shape == (n_target, out_channels)
    assert jnp.allclose(pred, ref, rtol=1e-2, atol=1e-2), "mismatch vs reference"

    print("KERNEL_OK")
</pallas_src>

<mosaic_0001>
module attributes {stable_mosaic.version = 11 : i64} {
  func.func @_interp_kernel(%arg0: i32, %arg1: memref<256x38xbf16, #tpu.memory_space<vmem>>, %arg2: memref<38x32xbf16, #tpu.memory_space<vmem>>, %arg3: memref<1x32xf32, #tpu.memory_space<vmem>>, %arg4: memref<32x32xbf16, #tpu.memory_space<vmem>>, %arg5: memref<1x32xf32, #tpu.memory_space<vmem>>, %arg6: memref<32x32xbf16, #tpu.memory_space<vmem>>, %arg7: memref<1x32xf32, #tpu.memory_space<vmem>>, %arg8: memref<32x96xbf16, #tpu.memory_space<vmem>>, %arg9: memref<1x96xf32, #tpu.memory_space<vmem>>, %arg10: memref<32x4xbf16, #tpu.memory_space<vmem>>, %arg11: memref<1x4xf32, #tpu.memory_space<vmem>>, %arg12: memref<4x16xf32, #tpu.memory_space<vmem>>) attributes {dimension_semantics = [#tpu.dimension_semantics<parallel>], iteration_bounds = array<i64: 1>, scalar_prefetch = 0 : i64, scratch_operands = 0 : i64, tpu.core_type = #tpu.core_type<tc>, window_params = [{transform_indices = @transform_0, window_bounds = array<i64: 256, 38>}, {pipeline_mode = #tpu.pipeline_mode<synchronous>, transform_indices = @transform_1, window_bounds = array<i64: 38, 32>}, {pipeline_mode = #tpu.pipeline_mode<synchronous>, transform_indices = @transform_2, window_bounds = array<i64: 1, 32>}, {pipeline_mode = #tpu.pipeline_mode<synchronous>, transform_indices = @transform_3, window_bounds = array<i64: 32, 32>}, {pipeline_mode = #tpu.pipeline_mode<synchronous>, transform_indices = @transform_4, window_bounds = array<i64: 1, 32>}, {pipeline_mode = #tpu.pipeline_mode<synchronous>, transform_indices = @transform_5, window_bounds = array<i64: 32, 32>}, {pipeline_mode = #tpu.pipeline_mode<synchronous>, transform_indices = @transform_6, window_bounds = array<i64: 1, 32>}, {pipeline_mode = #tpu.pipeline_mode<synchronous>, transform_indices = @transform_7, window_bounds = array<i64: 32, 96>}, {pipeline_mode = #tpu.pipeline_mode<synchronous>, transform_indices = @transform_8, window_bounds = array<i64: 1, 96>}, {pipeline_mode = #tpu.pipeline_mode<synchronous>, transform_indices = @transform_9, window_bounds = array<i64: 32, 4>}, {pipeline_mode = #tpu.pipeline_mode<synchronous>, transform_indices = @transform_10, window_bounds = array<i64: 1, 4>}, {transform_indices = @transform_11, window_bounds = array<i64: 4, 16>}]} {
    %c0 = arith.constant 0 : index
    %c0_0 = arith.constant 0 : index
    %0 = vector.load %arg1[%c0, %c0_0] : memref<256x38xbf16, #tpu.memory_space<vmem>>, vector<256x38xbf16>
    %c0_1 = arith.constant 0 : index
    %c0_2 = arith.constant 0 : index
    %1 = vector.load %arg2[%c0_1, %c0_2] : memref<38x32xbf16, #tpu.memory_space<vmem>>, vector<38x32xbf16>
    %cst = arith.constant dense<0.000000e+00> : vector<256x32xf32>
    %2 = tpu.matmul %0, %1, %cst {dimension_numbers = #tpu.dot_dimension_numbers<[1], [0], [0], [1], [0, 0, 1, 1], [], []>} : vector<256x38xbf16>, vector<38x32xbf16>, vector<256x32xf32> -> vector<256x32xf32>
    %c0_3 = arith.constant 0 : index
    %c0_4 = arith.constant 0 : index
    %3 = vector.load %arg3[%c0_3, %c0_4] : memref<1x32xf32, #tpu.memory_space<vmem>>, vector<1x32xf32>
    %4 = vector.broadcast %3 : vector<1x32xf32> to vector<256x32xf32>
    %5 = arith.addf %2, %4 : vector<256x32xf32>
    %cst_5 = arith.constant 0.000000e+00 : f32
    %6 = vector.broadcast %cst_5 : f32 to vector<256x32xf32>
    %7 = arith.maximumf %5, %6 : vector<256x32xf32>
    %8 = arith.truncf %7 : vector<256x32xf32> to vector<256x32xbf16>
    %c0_6 = arith.constant 0 : index
    %c0_7 = arith.constant 0 : index
    %9 = vector.load %arg4[%c0_6, %c0_7] : memref<32x32xbf16, #tpu.memory_space<vmem>>, vector<32x32xbf16>
    %cst_8 = arith.constant dense<0.000000e+00> : vector<256x32xf32>
    %10 = tpu.matmul %8, %9, %cst_8 {dimension_numbers = #tpu.dot_dimension_numbers<[1], [0], [0], [1], [0, 0, 1, 1], [], []>} : vector<256x32xbf16>, vector<32x32xbf16>, vector<256x32xf32> -> vector<256x32xf32>
    %c0_9 = arith.constant 0 : index
    %c0_10 = arith.constant 0 : index
    %11 = vector.load %arg5[%c0_9, %c0_10] : memref<1x32xf32, #tpu.memory_space<vmem>>, vector<1x32xf32>
    %12 = vector.broadcast %11 : vector<1x32xf32> to vector<256x32xf32>
    %13 = arith.addf %10, %12 : vector<256x32xf32>
    %cst_11 = arith.constant 0.000000e+00 : f32
    %14 = vector.broadcast %cst_11 : f32 to vector<256x32xf32>
    %15 = arith.maximumf %13, %14 : vector<256x32xf32>
    %16 = arith.truncf %15 : vector<256x32xf32> to vector<256x32xbf16>
    %c0_12 = arith.constant 0 : index
    %c0_13 = arith.constant 0 : index
    %17 = vector.load %arg6[%c0_12, %c0_13] : memref<32x32xbf16, #tpu.memory_space<vmem>>, vector<32x32xbf16>
    %cst_14 = arith.constant dense<0.000000e+00> : vector<256x32xf32>
    %18 = tpu.matmul %16, %17, %cst_14 {dimension_numbers = #tpu.dot_dimension_numbers<[1], [0], [0], [1], [0, 0, 1, 1], [], []>} : vector<256x32xbf16>, vector<32x32xbf16>, vector<256x32xf32> -> vector<256x32xf32>
    %c0_15 = arith.constant 0 : index
    %c0_16 = arith.constant 0 : index
    %19 = vector.load %arg7[%c0_15, %c0_16] : memref<1x32xf32, #tpu.memory_space<vmem>>, vector<1x32xf32>
    %20 = vector.broadcast %19 : vector<1x32xf32> to vector<256x32xf32>
    %21 = arith.addf %18, %20 : vector<256x32xf32>
    %cst_17 = arith.constant 0.000000e+00 : f32
    %22 = vector.broadcast %cst_17 : f32 to vector<256x32xf32>
    %23 = arith.maximumf %21, %22 : vector<256x32xf32>
    %24 = arith.truncf %23 : vector<256x32xf32> to vector<256x32xbf16>
    %c0_18 = arith.constant 0 : index
    %c0_19 = arith.constant 0 : index
    %25 = vector.load %arg8[%c0_18, %c0_19] : memref<32x96xbf16, #tpu.memory_space<vmem>>, vector<32x96xbf16>
    %cst_20 = arith.constant dense<0.000000e+00> : vector<256x96xf32>
    %26 = tpu.matmul %24, %25, %cst_20 {dimension_numbers = #tpu.dot_dimension_numbers<[1], [0], [0], [1], [0, 0, 1, 1], [], []>} : vector<256x32xbf16>, vector<32x96xbf16>, vector<256x96xf32> -> vector<256x96xf32>
    %c0_21 = arith.constant 0 : index
    %c0_22 = arith.constant 0 : index
    %27 = vector.load %arg9[%c0_21, %c0_22] : memref<1x96xf32, #tpu.memory_space<vmem>>, vector<1x96xf32>
    %28 = vector.broadcast %27 : vector<1x96xf32> to vector<256x96xf32>
    %29 = arith.addf %26, %28 : vector<256x96xf32>
    %30 = vector.extract_strided_slice %29 {offsets = [0, 0], sizes = [256, 64], strides = [1, 1]} : vector<256x96xf32> to vector<256x64xf32>
    %31 = vector.extract_strided_slice %29 {offsets = [0, 64], sizes = [256, 32], strides = [1, 1]} : vector<256x96xf32> to vector<256x32xf32>
    %cst_23 = arith.constant dense<0xFF800000> : vector<256xf32>
    %32 = vector.multi_reduction <maximumf>, %30, %cst_23 [1] : vector<256x64xf32> to vector<256xf32>
    %33 = vector.shape_cast %32 : vector<256xf32> to vector<256x1xf32>
    %34 = vector.broadcast %33 : vector<256x1xf32> to vector<256x64xf32>
    %35 = arith.subf %30, %34 : vector<256x64xf32>
    %36 = math.exp %35 : vector<256x64xf32>
    %cst_24 = arith.constant dense<0.000000e+00> : vector<256xf32>
    %37 = vector.multi_reduction <add>, %36, %cst_24 [1] : vector<256x64xf32> to vector<256xf32>
    %38 = vector.shape_cast %37 : vector<256xf32> to vector<256x1xf32>
    %39 = tpu.reciprocal %38 {approx = true} : vector<256x1xf32> -> vector<256x1xf32>
    %40 = arith.mulf %38, %39 : vector<256x1xf32>
    %cst_25 = arith.constant 1.562500e-02 : f32
    %41 = vector.broadcast %cst_25 : f32 to vector<256x1xf32>
    %42 = arith.mulf %40, %41 : vector<256x1xf32>
    %43 = vector.broadcast %42 : vector<256x1xf32> to vector<256x32xf32>
    %44 = arith.mulf %43, %31 : vector<256x32xf32>
    %45 = vector.shape_cast %44 : vector<256x32xf32> to vector<16x16x32xf32>
    %cst_26 = arith.constant dense<0.000000e+00> : vector<16x32xf32>
    %46 = vector.multi_reduction <add>, %45, %cst_26 [1] : vector<16x16x32xf32> to vector<16x32xf32>
    %47 = arith.truncf %46 : vector<16x32xf32> to vector<16x32xbf16>
    %c0_27 = arith.constant 0 : index
    %c0_28 = arith.constant 0 : index
    %48 = vector.load %arg10[%c0_27, %c0_28] : memref<32x4xbf16, #tpu.memory_space<vmem>>, vector<32x4xbf16>
    %cst_29 = arith.constant dense<0.000000e+00> : vector<16x4xf32>
    %49 = tpu.matmul %47, %48, %cst_29 {dimension_numbers = #tpu.dot_dimension_numbers<[1], [0], [0], [1], [0, 0, 1, 1], [], []>} : vector<16x32xbf16>, vector<32x4xbf16>, vector<16x4xf32> -> vector<16x4xf32>
    %c0_30 = arith.constant 0 : index
    %c0_31 = arith.constant 0 : index
    %50 = vector.load %arg11[%c0_30, %c0_31] : memref<1x4xf32, #tpu.memory_space<vmem>>, vector<1x4xf32>
    %51 = vector.broadcast %50 : vector<1x4xf32> to vector<16x4xf32>
    %52 = arith.addf %49, %51 : vector<16x4xf32>
    %53 = tpu.transpose %52, [1, 0] : vector<16x4xf32> -> vector<4x16xf32>
    %c0_32 = arith.constant 0 : index
    %c0_33 = arith.constant 0 : index
    %54 = vector.load %arg12[%c0_32, %c0_33] : memref<4x16xf32, #tpu.memory_space<vmem>>, vector<4x16xf32>
    tpu.vector_store %arg12[%c0_32, %c0_33], %53 {strides = array<i32>} : memref<4x16xf32, #tpu.memory_space<vmem>>, vector<4x16xf32>,
    return
  }
  func.func @transform_0(%arg0: i32) -> (i32, i32) {
    %c0_i32 = arith.constant 0 : i32
    %c0_i32_0 = arith.constant 0 : i32
    return %arg0, %c0_i32 : i32, i32
  }
  func.func @transform_1(%arg0: i32) -> (i32, i32) {
    %c0_i32 = arith.constant 0 : i32
    %c0_i32_0 = arith.constant 0 : i32
    %c0_i32_1 = arith.constant 0 : i32
    return %c0_i32, %c0_i32_0 : i32, i32
  }
  func.func @transform_2(%arg0: i32) -> (i32, i32) {
    %c0_i32 = arith.constant 0 : i32
    %c0_i32_0 = arith.constant 0 : i32
    %c0_i32_1 = arith.constant 0 : i32
    return %c0_i32, %c0_i32_0 : i32, i32
  }
  func.func @transform_3(%arg0: i32) -> (i32, i32) {
    %c0_i32 = arith.constant 0 : i32
    %c0_i32_0 = arith.constant 0 : i32
    %c0_i32_1 = arith.constant 0 : i32
    return %c0_i32, %c0_i32_0 : i32, i32
  }
  func.func @transform_4(%arg0: i32) -> (i32, i32) {
    %c0_i32 = arith.constant 0 : i32
    %c0_i32_0 = arith.constant 0 : i32
    %c0_i32_1 = arith.constant 0 : i32
    return %c0_i32, %c0_i32_0 : i32, i32
  }
  func.func @transform_5(%arg0: i32) -> (i32, i32) {
    %c0_i32 = arith.constant 0 : i32
    %c0_i32_0 = arith.constant 0 : i32
    %c0_i32_1 = arith.constant 0 : i32
    return %c0_i32, %c0_i32_0 : i32, i32
  }
  func.func @transform_6(%arg0: i32) -> (i32, i32) {
    %c0_i32 = arith.constant 0 : i32
    %c0_i32_0 = arith.constant 0 : i32
    %c0_i32_1 = arith.constant 0 : i32
    return %c0_i32, %c0_i32_0 : i32, i32
  }
  func.func @transform_7(%arg0: i32) -> (i32, i32) {
    %c0_i32 = arith.constant 0 : i32
    %c0_i32_0 = arith.constant 0 : i32
    %c0_i32_1 = arith.constant 0 : i32
    return %c0_i32, %c0_i32_0 : i32, i32
  }
  func.func @transform_8(%arg0: i32) -> (i32, i32) {
    %c0_i32 = arith.constant 0 : i32
    %c0_i32_0 = arith.constant 0 : i32
    %c0_i32_1 = arith.constant 0 : i32
    return %c0_i32, %c0_i32_0 : i32, i32
  }
  func.func @transform_9(%arg0: i32) -> (i32, i32) {
    %c0_i32 = arith.constant 0 : i32
    %c0_i32_0 = arith.constant 0 : i32
    %c0_i32_1 = arith.constant 0 : i32
    return %c0_i32, %c0_i32_0 : i32, i32
  }
  func.func @transform_10(%arg0: i32) -> (i32, i32) {
    %c0_i32 = arith.constant 0 : i32
    %c0_i32_0 = arith.constant 0 : i32
    %c0_i32_1 = arith.constant 0 : i32
    return %c0_i32, %c0_i32_0 : i32, i32
  }
  func.func @transform_11(%arg0: i32) -> (i32, i32) {
    %c0_i32 = arith.constant 0 : i32
    %c0_i32_0 = arith.constant 0 : i32
    return %c0_i32, %arg0 : i32, i32
  }
}

</mosaic_0001>

<bundles_post_ra>
// kernel: tpu_custom_call.1
= control target key start
LH: loop header
LB: loop body
LE: loop exit
PB: predicated region body
PF: predicated region fallthrough
CT: control target
= control target key end

     0   :  { %vm179_vm0 = vcmask 310272   ;;  %vm228_vm1 = vcmask 1042432   ;;  %s3260_s0 = inlined_call_operand.vmem [shape: bf16[256,38], index: 0, kind: input, shape index: {}]   ;;  %s3261_s1 = inlined_call_operand.vmem [shape: bf16[38,32], index: 1, kind: input, shape index: {}]   ;;  %s3262_s2 = inlined_call_operand.vmem [shape: f32[1,32], index: 2, kind: input, shape index: {}]   ;;  %s3263_s3 = inlined_call_operand.vmem [shape: bf16[32,32], index: 3, kind: input, shape index: {}]   ;;  %s3264_s4 = inlined_call_operand.vmem [shape: f32[1,32], index: 4, kind: input, shape index: {}]   ;;  %s3265_s5 = inlined_call_operand.vmem [shape: bf16[32,32], index: 5, kind: input, shape index: {}]   ;;  %s3266_s6 = inlined_call_operand.vmem [shape: f32[1,32], index: 6, kind: input, shape index: {}]   ;;  %s3267_s7 = inlined_call_operand.vmem [shape: bf16[32,96], index: 7, kind: input, shape index: {}]   ;;  %s3268_s8 = inlined_call_operand.vmem [shape: f32[1,96], index: 8, kind: input, shape index: {}]   ;;  %s3269_s9 = inlined_call_operand.vmem [shape: bf16[32,4], index: 9, kind: input, shape index: {}]   ;;  %s3270_s10 = inlined_call_operand.vmem [shape: f32[1,4], index: 10, kind: input, shape index: {}]   ;;  %s3271_s11 = inlined_call_operand.hbm [shape: f32[4,16], index: 11, kind: output, shape index: {}]  }
   0x1   :  { %v2315_v0 = vld [vmem:[%s3261_s1] sm:$0xff]   ;;  %v2316_v1 = vld [vmem:[%s3261_s1 + $0x8] sm:$0xff]   ;;  %v2317_v2 = vld [vmem:[%s3261_s1 + $0x10] ss:$0 sps:$4 sm:$0x77]  }
   0x2   :  { %2156 = vmatprep.subr.bf16.mxu0 %v2315_v0  ;;  %v2318_v3 = vld [vmem:[%s3260_s0] sm:$0xff]   ;;  %v230_v4 = vsel %vm228_vm1, %v2317_v2, 0  ;;  %v2319_v5 = vld [vmem:[%s3260_s0 + $0x8] sm:$0xff]   ;;  %v2320_v6 = vld [vmem:[%s3260_s0 + $0x10] sm:$0xff]  }
   0x3   :  { %2157 = vmatpush3.bf16.msra.mxu0 %v2315_v0  ;;  %2162 = vmatprep.mubr.msk.bf16.mxu0 %vm179_vm0, %v2318_v3  ;;  %v2321_v7 = vld [vmem:[%s3260_s0 + $0x18] sm:$0xff]   ;;  %v2322_v8 = vld [vmem:[%s3260_s0 + $0x20] sm:$0xff]  }
   0x4   :  { %2158 = vmatprep.subr.bf16.mxu0 %v2316_v1 }
   0x7   :  { %2159 = vmatpush3.bf16.msra.mxu0 %v2316_v1 }
   0x8   :  { %2310 = vmatprep.subr.msk.bf16.mxu0 %vm228_vm1, %v2317_v2 }
   0xb   :  { %2161 = vmatpush3.bf16.msra.mxu0 %v230_v4 }
   0xe   :  { %2163 = vmatmul.mubr.msk.bf16.vlgmr.msra.gmra.mrb[0].mxu0 %vm179_vm0, %v2319_v5 }
   0xf   :  { %2166 = vmatprep.mubr.msk.bf16.mxu0 %vm179_vm0, %v2320_v6 }
  0x16   :  { %2167 = vmatmul.mubr.msk.bf16.gmra.mrb[4].mxu0 %vm179_vm0, %v2321_v7 }
  0x17   :  { %2170 = vmatprep.mubr.msk.bf16.mxu0 %vm179_vm0, %v2322_v8 }
  0x18   :  { %16 = vsyncpa [#allocation3], 0  ;;  %v2323_v9 = vld [vmem:[%s3260_s0 + $0x28] sm:$0xff]   ;;  %v2324_v10 = vld [vmem:[%s3260_s0 + $0x30] sm:$0xff]   ;;  %vm464_vm2 = vcmask 261120   ;;  %vm1234_vm3 = vcmask 523264  }
  0x19   :  { %v2325_v11 = vld [vmem:[%s3260_s0 + $0x38] sm:$0xff]   ;;  %v2326_v12 = vld [vmem:[%s3260_s0 + $0x40] sm:$0xff]   ;;  %v2327_v13 = vld [vmem:[%s3260_s0 + $0x48] sm:$0xff]   ;;  %vm2495_vm4 = vmmov 0   ;;  %vm1651_vm5 = vcmask 785920   ;;  %vm1855_vm6 = vcmask 1041409  }
  0x1a   :  { %v2328_v14 = vld [vmem:[%s3260_s0 + $0x50] sm:$0xff]   ;;  %v2329_v15 = vld [vmem:[%s3260_s0 + $0x58] sm:$0xff]   ;;  %v2330_v16 = vld [vmem:[%s3260_s0 + $0x60] sm:$0xff]   ;;  %vm1857_vm7 = vcmask 1042434   ;;  %vm1859_vm8 = vcmask 1043459   ;;  %vm1861_vm9 = vcmask 1044484  }
  0x1b   :  { %v2331_v17 = vld [vmem:[%s3260_s0 + $0x68] sm:$0xff]   ;;  %v2332_v18 = vld [vmem:[%s3260_s0 + $0x70] sm:$0xff]   ;;  %v2333_v19 = vld [vmem:[%s3260_s0 + $0x78] sm:$0xff]   ;;  %vm1863_vm10 = vcmask 1045509   ;;  %vm1865_vm11 = vcmask 1046534   ;;  %vm1867_vm12 = vcmask 1047559  }
  0x1c   :  { %v2334_v20 = vld [vmem:[%s3263_s3] sm:$0xff]   ;;  %v2335_v21 = vld [vmem:[%s3263_s3 + $0x8] sm:$0xff]   ;;  %s2497_s13 = smov [#allocation2]   ;;  %vm1967_vm13 = vcmask 125952  }
  0x1d   :  { %2194 = vmatprep.subr.bf16.mxu1 %v2334_v20  ;;  %v2336_v22 = vld [vmem:[%s3265_s5] sm:$0xff]   ;;  %v2337_v41 = vld [vmem:[%s3265_s5 + $0x8] sm:$0xff]   ;;  %s1975_s14 = sshll.u32 %s2497_s13, 4  ;;  %s1976_s14 = int_to_ptr.vmem [resolvable:$true] %s1975_s14 }
  0x1e   :  { %2171 = vmatmul.mubr.msk.bf16.gmra.mrb[8].mxu0 %vm179_vm0, %v2323_v9  ;;  %2195 = vmatpush3.bf16.msra.mxu1 %v2334_v20  ;;  %v2643_v23 = vld [vmem:[%s3262_s2] ss:$0 sm:$0xff]  ;;  %s2470_s15 = scalar_lea.vmem %s1976_s14, 64  ;;  %p2475_p1 = scmp.lt.s32.totalorder %s1976_s14, %s1976_s14 }
  0x1f   :  { %2174 = vmatprep.mubr.msk.bf16.mxu0 %vm179_vm0, %v2324_v10  ;;  %2196 = vmatprep.subr.bf16.mxu1 %v2335_v21  ;;  %p2471_p0 = scmp.ne.s32.totalorder %s1976_s14, %s2470_s15  ;;  %p2476_p2 = scmp.lt.s32.totalorder %s2470_s15, %s2470_s15 }
  0x21   :  { %p2477_p3 = por %p2476_p2, %p2475_p1 }
  0x22   :  { %2197 = vmatpush3.bf16.msra.mxu1 %v2335_v21 }
  0x23   :  { %2230 = vmatprep.subr.bf16.mxu1 %v2336_v22  ;;  %p2478_p4 = pnand %p2477_p3, %p2471_p0 }
  0x26   :  { %2175 = vmatmul.mubr.msk.bf16.gmra.mrb[12].mxu0 %vm179_vm0, %v2325_v11 }
  0x27   :  { %2178 = vmatprep.mubr.msk.bf16.mxu0 %vm179_vm0, %v2326_v12 }
  0x2e   :  { %2179 = vmatmul.mubr.msk.bf16.gmra.mrb[16].mxu0 %vm179_vm0, %v2327_v13 }
  0x2f   :  { %2182 = vmatprep.mubr.msk.bf16.mxu0 %vm179_vm0, %v2328_v14 }
  0x36   :  { %2183 = vmatmul.mubr.msk.bf16.gmra.mrb[20].mxu0 %vm179_vm0, %v2329_v15 }
  0x37   :  { %2186 = vmatprep.mubr.msk.bf16.mxu0 %vm179_vm0, %v2330_v16 }
  0x3e   :  { %2187 = vmatmul.mubr.msk.bf16.gmra.mrb[24].mxu0 %vm179_vm0, %v2331_v17 }
  0x3f   :  { %2190 = vmatprep.mubr.msk.bf16.mxu0 %vm179_vm0, %v2332_v18 }
  0x46   :  { %2191 = vmatmul.mubr.msk.bf16.gmra.mrb[28].mxu0 %vm179_vm0, %v2333_v19 }
  0xe1   :  { %v2164_v24 = vpop.f32.mrb[0].mxu0 }
  0xe2   :  { %v275_v25 = vadd.f32 %v2164_v24, %v2643_v23  ;;  %v266_v26 = vpop.f32.mrb[1].mxu0 }
  0xe3   :  { %v267_v27 = vadd.f32 %v2643_v23, %v266_v26  ;;  %v2165_v28 = vpop.f32.mrb[2].mxu0 }
  0xe4   :  { %v278_v29 = vadd.f32 %v2165_v28, %v2643_v23  ;;  %v269_v30 = vpop.f32.mrb[3].mxu0  ;;  %v395_v32 = vmax.f32 %v275_v25, 0.0 }
  0xe5   :  { %v270_v31 = vadd.f32 %v2643_v23, %v269_v30  ;;  %v393_v34 = vmax.f32 %v267_v27, 0.0 }
  0xe6   :  { %v396_v33 = vmax.f32 %v278_v29, 0.0 }
  0xe7   :  { %v394_v35 = vmax.f32 %v270_v31, 0.0 }
  0xe8   :  { %v426_v36 = vpack.c.bf16 %v396_v33, %v395_v32 }
  0xe9   :  { %v2168_v37 = vpop.f32.mrb[4].mxu0  ;;  %v425_v38 = vpack.c.bf16 %v394_v35, %v393_v34 }
  0xea   :  { %v291_v39 = vadd.f32 %v2168_v37, %v2643_v23  ;;  %v282_v40 = vpop.f32.mrb[5].mxu0 }
  0xeb   :  { %v283_v42 = vadd.f32 %v2643_v23, %v282_v40  ;;  %v2169_v43 = vpop.f32.mrb[6].mxu0  ;;  %2198 = vmatprep.mubr.msk.bf16.mxu1 %vm464_vm2, %v425_v38 }
  0xec   :  { %v399_v44 = vmax.f32 %v291_v39, 0.0  ;;  %v294_v45 = vadd.f32 %v2169_v43, %v2643_v23  ;;  %v285_v46 = vpop.f32.mrb[7].mxu0  ;;  %2199 = vmatmul.mubr.msk.bf16.vlgmr.msra.gmra.mrb[0].mxu1 %vm464_vm2, %v426_v36 }
  0xed   :  { %v286_v47 = vadd.f32 %v2643_v23, %v285_v46  ;;  %2231 = vmatpush3.bf16.msra.mxu1 %v2336_v22  ;;  %v397_v49 = vmax.f32 %v283_v42, 0.0 }
  0xee   :  { %v400_v48 = vmax.f32 %v294_v45, 0.0  ;;  %2232 = vmatprep.subr.bf16.mxu1 %v2337_v41 }
  0xef   :  { %v398_v50 = vmax.f32 %v286_v47, 0.0 }
  0xf0   :  { %v428_v51 = vpack.c.bf16 %v400_v48, %v399_v44 }
  0xf1   :  { %v427_v52 = vpack.c.bf16 %v398_v50, %v397_v49  ;;  %v2172_v53 = vpop.f32.mrb[8].mxu0  ;;  %2233 = vmatpush3.bf16.msra.mxu1 %v2337_v41 }
  0xf2   :  { %v307_v54 = vadd.f32 %v2172_v53, %v2643_v23  ;;  %v298_v55 = vpop.f32.mrb[9].mxu0 }
  0xf3   :  { %v299_v56 = vadd.f32 %v2643_v23, %v298_v55  ;;  %v2173_v57 = vpop.f32.mrb[10].mxu0  ;;  %2202 = vmatprep.mubr.msk.bf16.mxu1 %vm464_vm2, %v427_v52 }
  0xf4   :  { %v403_v58 = vmax.f32 %v307_v54, 0.0  ;;  %v310_v59 = vadd.f32 %v2173_v57, %v2643_v23  ;;  %v301_v60 = vpop.f32.mrb[11].mxu0  ;;  %2203 = vmatmul.mubr.msk.bf16.gmra.mrb[4].mxu1 %vm464_vm2, %v428_v51 }
  0xf5   :  { %v302_v61 = vadd.f32 %v2643_v23, %v301_v60  ;;  %v401_v63 = vmax.f32 %v299_v56, 0.0 }
  0xf6   :  { %v404_v62 = vmax.f32 %v310_v59, 0.0 }
  0xf7   :  { %v402_v0 = vmax.f32 %v302_v61, 0.0 }
  0xf8   :  { %v430_v1 = vpack.c.bf16 %v404_v62, %v403_v58 }
  0xf9   :  { %v429_v2 = vpack.c.bf16 %v402_v0, %v401_v63  ;;  %v2176_v3 = vpop.f32.mrb[12].mxu0 }
  0xfa   :  { %v323_v4 = vadd.f32 %v2176_v3, %v2643_v23  ;;  %v314_v5 = vpop.f32.mrb[13].mxu0 }
  0xfb   :  { %v315_v6 = vadd.f32 %v2643_v23, %v314_v5  ;;  %v2177_v7 = vpop.f32.mrb[14].mxu0  ;;  %2206 = vmatprep.mubr.msk.bf16.mxu1 %vm464_vm2, %v429_v2 }
  0xfc   :  { %v407_v8 = vmax.f32 %v323_v4, 0.0  ;;  %v326_v9 = vadd.f32 %v2177_v7, %v2643_v23  ;;  %v317_v10 = vpop.f32.mrb[15].mxu0  ;;  %2207 = vmatmul.mubr.msk.bf16.gmra.mrb[8].mxu1 %vm464_vm2, %v430_v1 }
  0xfd   :  { %v318_v11 = vadd.f32 %v2643_v23, %v317_v10  ;;  %v405_v13 = vmax.f32 %v315_v6, 0.0  ;;  %v2338_v10 = vld [vmem:[%s3267_s7] sm:$0xff]  }
  0xfe   :  { %v408_v12 = vmax.f32 %v326_v9, 0.0  ;;  %2266 = vmatprep.subr.bf16.mxu0 %v2338_v10 }
  0xff   :  { %v406_v14 = vmax.f32 %v318_v11, 0.0  ;;  %v2339_v11 = vld [vmem:[%s3267_s7 + $0x8] sm:$0xff]   ;;  %2267 = vmatpush3.bf16.msra.mxu0 %v2338_v10 }
 0x100   :  { %v432_v15 = vpack.c.bf16 %v408_v12, %v407_v8  ;;  %2268 = vmatprep.subr.bf16.mxu0 %v2339_v11 }
 0x101   :  { %v431_v16 = vpack.c.bf16 %v406_v14, %v405_v13  ;;  %v2180_v17 = vpop.f32.mrb[16].mxu0 }
 0x102   :  { %v339_v18 = vadd.f32 %v2180_v17, %v2643_v23  ;;  %v330_v19 = vpop.f32.mrb[17].mxu0 }
 0x103   :  { %v331_v20 = vadd.f32 %v2643_v23, %v330_v19  ;;  %v2181_v21 = vpop.f32.mrb[18].mxu0  ;;  %2210 = vmatprep.mubr.msk.bf16.mxu1 %vm464_vm2, %v431_v16  ;;  %2269 = vmatpush3.bf16.msra.mxu0 %v2339_v11 }
 0x104   :  { %v411_v22 = vmax.f32 %v339_v18, 0.0  ;;  %v342_v24 = vadd.f32 %v2181_v21, %v2643_v23  ;;  %v333_v25 = vpop.f32.mrb[19].mxu0  ;;  %2211 = vmatmul.mubr.msk.bf16.gmra.mrb[12].mxu1 %vm464_vm2, %v432_v15 }
 0x105   :  { %v334_v26 = vadd.f32 %v2643_v23, %v333_v25  ;;  %v409_v28 = vmax.f32 %v331_v20, 0.0 }
 0x106   :  { %v412_v27 = vmax.f32 %v342_v24, 0.0 }
 0x107   :  { %v410_v29 = vmax.f32 %v334_v26, 0.0 }
 0x108   :  { %v434_v30 = vpack.c.bf16 %v412_v27, %v411_v22 }
 0x109   :  { %v433_v31 = vpack.c.bf16 %v410_v29, %v409_v28  ;;  %v2184_v32 = vpop.f32.mrb[20].mxu0 }
 0x10a   :  { %v355_v33 = vadd.f32 %v2184_v32, %v2643_v23  ;;  %v346_v34 = vpop.f32.mrb[21].mxu0 }
 0x10b   :  { %v347_v35 = vadd.f32 %v2643_v23, %v346_v34  ;;  %v2185_v36 = vpop.f32.mrb[22].mxu0  ;;  %2214 = vmatprep.mubr.msk.bf16.mxu1 %vm464_vm2, %v433_v31 }
 0x10c   :  { %v415_v37 = vmax.f32 %v355_v33, 0.0  ;;  %v358_v38 = vadd.f32 %v2185_v36, %v2643_v23  ;;  %v349_v39 = vpop.f32.mrb[23].mxu0  ;;  %2215 = vmatmul.mubr.msk.bf16.gmra.mrb[16].mxu1 %vm464_vm2, %v434_v30 }
 0x10d   :  { %v350_v40 = vadd.f32 %v2643_v23, %v349_v39  ;;  %v413_v42 = vmax.f32 %v347_v35, 0.0 }
 0x10e   :  { %v416_v41 = vmax.f32 %v358_v38, 0.0 }
 0x10f   :  { %v414_v43 = vmax.f32 %v350_v40, 0.0 }
 0x110   :  { %v436_v44 = vpack.c.bf16 %v416_v41, %v415_v37 }
 0x111   :  { %v435_v45 = vpack.c.bf16 %v414_v43, %v413_v42  ;;  %v2188_v46 = vpop.f32.mrb[24].mxu0 }
 0x112   :  { %v371_v47 = vadd.f32 %v2188_v46, %v2643_v23  ;;  %v362_v48 = vpop.f32.mrb[25].mxu0 }
 0x113   :  { %v363_v49 = vadd.f32 %v2643_v23, %v362_v48  ;;  %v2189_v50 = vpop.f32.mrb[26].mxu0  ;;  %2218 = vmatprep.mubr.msk.bf16.mxu1 %vm464_vm2, %v435_v45 }
 0x114   :  { %v419_v51 = vmax.f32 %v371_v47, 0.0  ;;  %v374_v52 = vadd.f32 %v2189_v50, %v2643_v23  ;;  %v365_v53 = vpop.f32.mrb[27].mxu0  ;;  %2219 = vmatmul.mubr.msk.bf16.gmra.mrb[20].mxu1 %vm464_vm2, %v436_v44 }
 0x115   :  { %v366_v54 = vadd.f32 %v2643_v23, %v365_v53  ;;  %v417_v56 = vmax.f32 %v363_v49, 0.0 }
 0x116   :  { %v420_v55 = vmax.f32 %v374_v52, 0.0 }
 0x117   :  { %v418_v57 = vmax.f32 %v366_v54, 0.0 }
 0x118   :  { %v438_v58 = vpack.c.bf16 %v420_v55, %v419_v51 }
 0x119   :  { %v437_v59 = vpack.c.bf16 %v418_v57, %v417_v56  ;;  %v2192_v60 = vpop.f32.mrb[28].mxu0 }
 0x11a   :  { %v387_v61 = vadd.f32 %v2192_v60, %v2643_v23  ;;  %v378_v62 = vpop.f32.mrb[29].mxu0 }
 0x11b   :  { %v379_v63 = vadd.f32 %v2643_v23, %v378_v62  ;;  %v2193_v0 = vpop.f32.mrb[30].mxu0  ;;  %2222 = vmatprep.mubr.msk.bf16.mxu1 %vm464_vm2, %v437_v59 }
 0x11c   :  { %v423_v1 = vmax.f32 %v387_v61, 0.0  ;;  %v390_v2 = vadd.f32 %v2193_v0, %v2643_v23  ;;  %v381_v3 = vpop.f32.mrb[31].mxu0  ;;  %2223 = vmatmul.mubr.msk.bf16.gmra.mrb[24].mxu1 %vm464_vm2, %v438_v58 }
 0x11d   :  { %v382_v4 = vadd.f32 %v2643_v23, %v381_v3  ;;  %v421_v6 = vmax.f32 %v379_v63, 0.0  ;;  %v2705_v23 = vld [vmem:[%s3264_s4] ss:$0 sm:$0xff] }
 0x11e   :  { %v424_v5 = vmax.f32 %v390_v2, 0.0 }
 0x11f   :  { %v422_v7 = vmax.f32 %v382_v4, 0.0 }
 0x120   :  { %v440_v8 = vpack.c.bf16 %v424_v5, %v423_v1 }
 0x121   :  { %v439_v9 = vpack.c.bf16 %v422_v7, %v421_v6 }
 0x123   :  { %2226 = vmatprep.mubr.msk.bf16.mxu1 %vm464_vm2, %v439_v9 }
 0x124   :  { %2227 = vmatmul.mubr.msk.bf16.gmra.mrb[28].mxu1 %vm464_vm2, %v440_v8 }
 0x1bf   :  { %v2200_v12 = vpop.f32.mrb[0].mxu1 }
 0x1c0   :  { %v556_v13 = vadd.f32 %v2200_v12, %v2705_v23  ;;  %v547_v14 = vpop.f32.mrb[1].mxu1 }
 0x1c1   :  { %v548_v15 = vadd.f32 %v2705_v23, %v547_v14  ;;  %v2201_v16 = vpop.f32.mrb[2].mxu1 }
 0x1c2   :  { %v559_v17 = vadd.f32 %v2201_v16, %v2705_v23  ;;  %v550_v18 = vpop.f32.mrb[3].mxu1  ;;  %v676_v20 = vmax.f32 %v556_v13, 0.0 }
 0x1c3   :  { %v551_v19 = vadd.f32 %v2705_v23, %v550_v18  ;;  %v674_v22 = vmax.f32 %v548_v15, 0.0 }
 0x1c4   :  { %v677_v21 = vmax.f32 %v559_v17, 0.0 }
 0x1c5   :  { %v675_v24 = vmax.f32 %v551_v19, 0.0 }
 0x1c6   :  { %v707_v25 = vpack.c.bf16 %v677_v21, %v676_v20 }
 0x1c7   :  { %v706_v26 = vpack.c.bf16 %v675_v24, %v674_v22  ;;  %v2204_v27 = vpop.f32.mrb[4].mxu1 }
 0x1c8   :  { %v572_v28 = vadd.f32 %v2204_v27, %v2705_v23  ;;  %v563_v29 = vpop.f32.mrb[5].mxu1 }
 0x1c9   :  { %v564_v30 = vadd.f32 %v2705_v23, %v563_v29  ;;  %v2205_v31 = vpop.f32.mrb[6].mxu1  ;;  %2234 = vmatprep.mubr.msk.bf16.mxu1 %vm464_vm2, %v706_v26 }
 0x1ca   :  { %v575_v32 = vadd.f32 %v2205_v31, %v2705_v23  ;;  %v566_v33 = vpop.f32.mrb[7].mxu1  ;;  %2235 = vmatmul.mubr.msk.bf16.vlgmr.msra.gmra.mrb[32].mxu1 %vm464_vm2, %v707_v25  ;;  %v680_v35 = vmax.f32 %v572_v28, 0.0 }
 0x1cb   :  { %v567_v34 = vadd.f32 %v2705_v23, %v566_v33  ;;  %v678_v37 = vmax.f32 %v564_v30, 0.0 }
 0x1cc   :  { %v681_v36 = vmax.f32 %v575_v32, 0.0 }
 0x1cd   :  { %v679_v38 = vmax.f32 %v567_v34, 0.0 }
 0x1ce   :  { %v709_v39 = vpack.c.bf16 %v681_v36, %v680_v35 }
 0x1cf   :  { %v708_v40 = vpack.c.bf16 %v679_v38, %v678_v37  ;;  %v2208_v41 = vpop.f32.mrb[8].mxu1 }
 0x1d0   :  { %v588_v42 = vadd.f32 %v2208_v41, %v2705_v23  ;;  %v579_v43 = vpop.f32.mrb[9].mxu1 }
 0x1d1   :  { %v580_v44 = vadd.f32 %v2705_v23, %v579_v43  ;;  %v2209_v45 = vpop.f32.mrb[10].mxu1  ;;  %2238 = vmatprep.mubr.msk.bf16.mxu1 %vm464_vm2, %v708_v40 }
 0x1d2   :  { %v591_v46 = vadd.f32 %v2209_v45, %v2705_v23  ;;  %v582_v47 = vpop.f32.mrb[11].mxu1  ;;  %2239 = vmatmul.mubr.msk.bf16.gmra.mrb[36].mxu1 %vm464_vm2, %v709_v39  ;;  %v684_v49 = vmax.f32 %v588_v42, 0.0 }
 0x1d3   :  { %v583_v48 = vadd.f32 %v2705_v23, %v582_v47  ;;  %v682_v51 = vmax.f32 %v580_v44, 0.0 }
 0x1d4   :  { %v685_v50 = vmax.f32 %v591_v46, 0.0 }
 0x1d5   :  { %v683_v52 = vmax.f32 %v583_v48, 0.0 }
 0x1d6   :  { %v711_v53 = vpack.c.bf16 %v685_v50, %v684_v49 }
 0x1d7   :  { %v710_v54 = vpack.c.bf16 %v683_v52, %v682_v51  ;;  %v2212_v55 = vpop.f32.mrb[12].mxu1 }
 0x1d8   :  { %v604_v56 = vadd.f32 %v2212_v55, %v2705_v23  ;;  %v595_v57 = vpop.f32.mrb[13].mxu1 }
 0x1d9   :  { %v596_v58 = vadd.f32 %v2705_v23, %v595_v57  ;;  %v2213_v59 = vpop.f32.mrb[14].mxu1  ;;  %2242 = vmatprep.mubr.msk.bf16.mxu1 %vm464_vm2, %v710_v54 }
 0x1da   :  { %v607_v60 = vadd.f32 %v2213_v59, %v2705_v23  ;;  %v598_v61 = vpop.f32.mrb[15].mxu1  ;;  %2243 = vmatmul.mubr.msk.bf16.gmra.mrb[40].mxu1 %vm464_vm2, %v711_v53  ;;  %v688_v63 = vmax.f32 %v604_v56, 0.0 }
 0x1db   :  { %v599_v62 = vadd.f32 %v2705_v23, %v598_v61  ;;  %v686_v1 = vmax.f32 %v596_v58, 0.0 }
 0x1dc   :  { %v689_v0 = vmax.f32 %v607_v60, 0.0 }
 0x1dd   :  { %v687_v2 = vmax.f32 %v599_v62, 0.0  ;;  %v2758_v62 = vld [vmem:[%s3266_s6] ss:$0 sm:$0xff] }
 0x1de   :  { %v713_v3 = vpack.c.bf16 %v689_v0, %v688_v63 }
 0x1df   :  { %v712_v4 = vpack.c.bf16 %v687_v2, %v686_v1  ;;  %v2216_v5 = vpop.f32.mrb[16].mxu1 }
 0x1e0   :  { %v620_v6 = vadd.f32 %v2216_v5, %v2705_v23  ;;  %v611_v7 = vpop.f32.mrb[17].mxu1 }
 0x1e1   :  { %v612_v8 = vadd.f32 %v2705_v23, %v611_v7  ;;  %v2217_v9 = vpop.f32.mrb[18].mxu1  ;;  %2246 = vmatprep.mubr.msk.bf16.mxu1 %vm464_vm2, %v712_v4 }
 0x1e2   :  { %v623_v10 = vadd.f32 %v2217_v9, %v2705_v23  ;;  %v614_v11 = vpop.f32.mrb[19].mxu1  ;;  %2247 = vmatmul.mubr.msk.bf16.gmra.mrb[44].mxu1 %vm464_vm2, %v713_v3  ;;  %v692_v13 = vmax.f32 %v620_v6, 0.0 }
 0x1e3   :  { %v615_v12 = vadd.f32 %v2705_v23, %v614_v11  ;;  %v690_v15 = vmax.f32 %v612_v8, 0.0 }
 0x1e4   :  { %v693_v14 = vmax.f32 %v623_v10, 0.0 }
 0x1e5   :  { %v691_v16 = vmax.f32 %v615_v12, 0.0 }
 0x1e6   :  { %v715_v17 = vpack.c.bf16 %v693_v14, %v692_v13 }
 0x1e7   :  { %v714_v18 = vpack.c.bf16 %v691_v16, %v690_v15  ;;  %v2220_v19 = vpop.f32.mrb[20].mxu1 }
 0x1e8   :  { %v636_v20 = vadd.f32 %v2220_v19, %v2705_v23  ;;  %v627_v21 = vpop.f32.mrb[21].mxu1 }
 0x1e9   :  { %v628_v22 = vadd.f32 %v2705_v23, %v627_v21  ;;  %v2221_v24 = vpop.f32.mrb[22].mxu1  ;;  %2250 = vmatprep.mubr.msk.bf16.mxu1 %vm464_vm2, %v714_v18 }
 0x1ea   :  { %v639_v25 = vadd.f32 %v2221_v24, %v2705_v23  ;;  %v630_v26 = vpop.f32.mrb[23].mxu1  ;;  %2251 = vmatmul.mubr.msk.bf16.gmra.mrb[48].mxu1 %vm464_vm2, %v715_v17  ;;  %v696_v28 = vmax.f32 %v636_v20, 0.0 }
 0x1eb   :  { %v631_v27 = vadd.f32 %v2705_v23, %v630_v26  ;;  %v694_v30 = vmax.f32 %v628_v22, 0.0 }
 0x1ec   :  { %v697_v29 = vmax.f32 %v639_v25, 0.0 }
 0x1ed   :  { %v695_v31 = vmax.f32 %v631_v27, 0.0 }
 0x1ee   :  { %v717_v32 = vpack.c.bf16 %v697_v29, %v696_v28 }
 0x1ef   :  { %v716_v33 = vpack.c.bf16 %v695_v31, %v694_v30  ;;  %v2224_v34 = vpop.f32.mrb[24].mxu1 }
 0x1f0   :  { %v652_v35 = vadd.f32 %v2224_v34, %v2705_v23  ;;  %v643_v36 = vpop.f32.mrb[25].mxu1 }
 0x1f1   :  { %v644_v37 = vadd.f32 %v2705_v23, %v643_v36  ;;  %v2225_v38 = vpop.f32.mrb[26].mxu1  ;;  %2254 = vmatprep.mubr.msk.bf16.mxu1 %vm464_vm2, %v716_v33 }
 0x1f2   :  { %v655_v39 = vadd.f32 %v2225_v38, %v2705_v23  ;;  %v646_v40 = vpop.f32.mrb[27].mxu1  ;;  %2255 = vmatmul.mubr.msk.bf16.gmra.mrb[52].mxu1 %vm464_vm2, %v717_v32  ;;  %v700_v42 = vmax.f32 %v652_v35, 0.0 }
 0x1f3   :  { %v647_v41 = vadd.f32 %v2705_v23, %v646_v40  ;;  %v698_v44 = vmax.f32 %v644_v37, 0.0 }
 0x1f4   :  { %v701_v43 = vmax.f32 %v655_v39, 0.0 }
 0x1f5   :  { %v699_v45 = vmax.f32 %v647_v41, 0.0 }
 0x1f6   :  { %v719_v46 = vpack.c.bf16 %v701_v43, %v700_v42 }
 0x1f7   :  { %v718_v47 = vpack.c.bf16 %v699_v45, %v698_v44  ;;  %v2228_v48 = vpop.f32.mrb[28].mxu1 }
 0x1f8   :  { %v668_v49 = vadd.f32 %v2228_v48, %v2705_v23  ;;  %v659_v50 = vpop.f32.mrb[29].mxu1 }
 0x1f9   :  { %v660_v51 = vadd.f32 %v2705_v23, %v659_v50  ;;  %v2229_v52 = vpop.f32.mrb[30].mxu1  ;;  %2258 = vmatprep.mubr.msk.bf16.mxu1 %vm464_vm2, %v718_v47 }
 0x1fa   :  { %v671_v53 = vadd.f32 %v2229_v52, %v2705_v23  ;;  %v662_v54 = vpop.f32.mrb[31].mxu1  ;;  %2259 = vmatmul.mubr.msk.bf16.gmra.mrb[56].mxu1 %vm464_vm2, %v719_v46  ;;  %v704_v56 = vmax.f32 %v668_v49, 0.0 }
 0x1fb   :  { %v663_v55 = vadd.f32 %v2705_v23, %v662_v54  ;;  %v702_v58 = vmax.f32 %v660_v51, 0.0 }
 0x1fc   :  { %v705_v57 = vmax.f32 %v671_v53, 0.0 }
 0x1fd   :  { %v703_v59 = vmax.f32 %v663_v55, 0.0 }
 0x1fe   :  { %v721_v60 = vpack.c.bf16 %v705_v57, %v704_v56 }
 0x1ff   :  { %v720_v61 = vpack.c.bf16 %v703_v59, %v702_v58 }
 0x201   :  { %2262 = vmatprep.mubr.msk.bf16.mxu1 %vm464_vm2, %v720_v61 }
 0x202   :  { %2263 = vmatmul.mubr.msk.bf16.gmra.mrb[60].mxu1 %vm464_vm2, %v721_v60 }
 0x29d   :  { %v2236_v63 = vpop.f32.mrb[32].mxu1 }
 0x29e   :  { %v836_v0 = vadd.f32 %v2236_v63, %v2758_v62  ;;  %v827_v1 = vpop.f32.mrb[33].mxu1 }
 0x29f   :  { %v828_v23 = vadd.f32 %v2758_v62, %v827_v1  ;;  %v2237_v2 = vpop.f32.mrb[34].mxu1 }
 0x2a0   :  { %v839_v3 = vadd.f32 %v2237_v2, %v2758_v62  ;;  %v830_v4 = vpop.f32.mrb[35].mxu1  ;;  %v956_v6 = vmax.f32 %v836_v0, 0.0 }
 0x2a1   :  { %v831_v5 = vadd.f32 %v2758_v62, %v830_v4  ;;  %v954_v8 = vmax.f32 %v828_v23, 0.0 }
 0x2a2   :  { %v957_v7 = vmax.f32 %v839_v3, 0.0 }
 0x2a3   :  { %v955_v9 = vmax.f32 %v831_v5, 0.0 }
 0x2a4   :  { %v987_v10 = vpack.c.bf16 %v957_v7, %v956_v6 }
 0x2a5   :  { %v986_v11 = vpack.c.bf16 %v955_v9, %v954_v8  ;;  %v2240_v12 = vpop.f32.mrb[36].mxu1 }
 0x2a6   :  { %v852_v13 = vadd.f32 %v2240_v12, %v2758_v62  ;;  %v843_v14 = vpop.f32.mrb[37].mxu1 }
 0x2a7   :  { %v844_v15 = vadd.f32 %v2758_v62, %v843_v14  ;;  %v2241_v16 = vpop.f32.mrb[38].mxu1  ;;  %2270 = vmatprep.mubr.msk.bf16.mxu0 %vm464_vm2, %v986_v11 }
 0x2a8   :  { %v855_v17 = vadd.f32 %v2241_v16, %v2758_v62  ;;  %v846_v18 = vpop.f32.mrb[39].mxu1  ;;  %2271 = vmatmul.mubr.msk.bf16.vlgmr.msra.gmra.mrb[32].mxu0 %vm464_vm2, %v987_v10  ;;  %v960_v20 = vmax.f32 %v852_v13, 0.0 }
 0x2a9   :  { %v847_v19 = vadd.f32 %v2758_v62, %v846_v18  ;;  %v958_v22 = vmax.f32 %v844_v15, 0.0 }
 0x2aa   :  { %v961_v21 = vmax.f32 %v855_v17, 0.0 }
 0x2ab   :  { %v959_v24 = vmax.f32 %v847_v19, 0.0 }
 0x2ac   :  { %v989_v25 = vpack.c.bf16 %v961_v21, %v960_v20 }
 0x2ad   :  { %v988_v26 = vpack.c.bf16 %v959_v24, %v958_v22  ;;  %v2244_v27 = vpop.f32.mrb[40].mxu1 }
 0x2ae   :  { %v868_v28 = vadd.f32 %v2244_v27, %v2758_v62  ;;  %v859_v29 = vpop.f32.mrb[41].mxu1 }
 0x2af   :  { %v860_v30 = vadd.f32 %v2758_v62, %v859_v29  ;;  %v2245_v31 = vpop.f32.mrb[42].mxu1  ;;  %2274 = vmatprep.mubr.msk.bf16.mxu0 %vm464_vm2, %v988_v26 }
 0x2b0   :  { %v871_v32 = vadd.f32 %v2245_v31, %v2758_v62  ;;  %v862_v33 = vpop.f32.mrb[43].mxu1  ;;  %2275 = vmatmul.mubr.msk.bf16.gmra.mrb[36].mxu0 %vm464_vm2, %v989_v25  ;;  %v964_v35 = vmax.f32 %v868_v28, 0.0 }
 0x2b1   :  { %v863_v34 = vadd.f32 %v2758_v62, %v862_v33  ;;  %v962_v37 = vmax.f32 %v860_v30, 0.0 }
 0x2b2   :  { %v965_v36 = vmax.f32 %v871_v32, 0.0 }
 0x2b3   :  { %v963_v38 = vmax.f32 %v863_v34, 0.0 }
 0x2b4   :  { %v991_v39 = vpack.c.bf16 %v965_v36, %v964_v35 }
 0x2b5   :  { %v990_v40 = vpack.c.bf16 %v963_v38, %v962_v37  ;;  %v2248_v41 = vpop.f32.mrb[44].mxu1 }
 0x2b6   :  { %v884_v42 = vadd.f32 %v2248_v41, %v2758_v62  ;;  %v875_v43 = vpop.f32.mrb[45].mxu1 }
 0x2b7   :  { %v876_v44 = vadd.f32 %v2758_v62, %v875_v43  ;;  %v2249_v45 = vpop.f32.mrb[46].mxu1  ;;  %2278 = vmatprep.mubr.msk.bf16.mxu0 %vm464_vm2, %v990_v40 }
 0x2b8   :  { %v887_v46 = vadd.f32 %v2249_v45, %v2758_v62  ;;  %v878_v47 = vpop.f32.mrb[47].mxu1  ;;  %2279 = vmatmul.mubr.msk.bf16.gmra.mrb[40].mxu0 %vm464_vm2, %v991_v39  ;;  %v968_v49 = vmax.f32 %v884_v42, 0.0 }
 0x2b9   :  { %v879_v48 = vadd.f32 %v2758_v62, %v878_v47  ;;  %v966_v51 = vmax.f32 %v876_v44, 0.0 }
 0x2ba   :  { %v969_v50 = vmax.f32 %v887_v46, 0.0 }
 0x2bb   :  { %v967_v52 = vmax.f32 %v879_v48, 0.0  ;;  %v2811_v48 = vld [vmem:[%s3268_s8] ss:$0 sm:$0xff] }
 0x2bc   :  { %v993_v53 = vpack.c.bf16 %v969_v50, %v968_v49 }
 0x2bd   :  { %v992_v54 = vpack.c.bf16 %v967_v52, %v966_v51  ;;  %v2252_v55 = vpop.f32.mrb[48].mxu1 }
 0x2be   :  { %v900_v56 = vadd.f32 %v2252_v55, %v2758_v62  ;;  %v891_v57 = vpop.f32.mrb[49].mxu1 }
 0x2bf   :  { %v892_v58 = vadd.f32 %v2758_v62, %v891_v57  ;;  %v2253_v59 = vpop.f32.mrb[50].mxu1  ;;  %2282 = vmatprep.mubr.msk.bf16.mxu0 %vm464_vm2, %v992_v54 }
 0x2c0   :  { %v903_v60 = vadd.f32 %v2253_v59, %v2758_v62  ;;  %v894_v61 = vpop.f32.mrb[51].mxu1  ;;  %2283 = vmatmul.mubr.msk.bf16.gmra.mrb[44].mxu0 %vm464_vm2, %v993_v53  ;;  %v972_v0 = vmax.f32 %v900_v56, 0.0 }
 0x2c1   :  { %v895_v63 = vadd.f32 %v2758_v62, %v894_v61  ;;  %v970_v23 = vmax.f32 %v892_v58, 0.0 }
 0x2c2   :  { %v973_v1 = vmax.f32 %v903_v60, 0.0 }
 0x2c3   :  { %v971_v2 = vmax.f32 %v895_v63, 0.0 }
 0x2c4   :  { %v995_v3 = vpack.c.bf16 %v973_v1, %v972_v0 }
 0x2c5   :  { %v994_v4 = vpack.c.bf16 %v971_v2, %v970_v23  ;;  %v2256_v5 = vpop.f32.mrb[52].mxu1 }
 0x2c6   :  { %v916_v6 = vadd.f32 %v2256_v5, %v2758_v62  ;;  %v907_v7 = vpop.f32.mrb[53].mxu1 }
 0x2c7   :  { %v908_v8 = vadd.f32 %v2758_v62, %v907_v7  ;;  %v2257_v9 = vpop.f32.mrb[54].mxu1  ;;  %2286 = vmatprep.mubr.msk.bf16.mxu0 %vm464_vm2, %v994_v4 }
 0x2c8   :  { %v919_v10 = vadd.f32 %v2257_v9, %v2758_v62  ;;  %v910_v11 = vpop.f32.mrb[55].mxu1  ;;  %2287 = vmatmul.mubr.msk.bf16.gmra.mrb[48].mxu0 %vm464_vm2, %v995_v3  ;;  %v976_v13 = vmax.f32 %v916_v6, 0.0 }
 0x2c9   :  { %v911_v12 = vadd.f32 %v2758_v62, %v910_v11  ;;  %v974_v15 = vmax.f32 %v908_v8, 0.0 }
 0x2ca   :  { %v977_v14 = vmax.f32 %v919_v10, 0.0 }
 0x2cb   :  { %v975_v16 = vmax.f32 %v911_v12, 0.0 }
 0x2cc   :  { %v997_v17 = vpack.c.bf16 %v977_v14, %v976_v13 }
 0x2cd   :  { %v996_v18 = vpack.c.bf16 %v975_v16, %v974_v15  ;;  %v2260_v19 = vpop.f32.mrb[56].mxu1 }
 0x2ce   :  { %v932_v20 = vadd.f32 %v2260_v19, %v2758_v62  ;;  %v923_v21 = vpop.f32.mrb[57].mxu1 }
 0x2cf   :  { %v924_v22 = vadd.f32 %v2758_v62, %v923_v21  ;;  %v2261_v24 = vpop.f32.mrb[58].mxu1  ;;  %2290 = vmatprep.mubr.msk.bf16.mxu0 %vm464_vm2, %v996_v18 }
 0x2d0   :  { %v935_v25 = vadd.f32 %v2261_v24, %v2758_v62  ;;  %v926_v26 = vpop.f32.mrb[59].mxu1  ;;  %2291 = vmatmul.mubr.msk.bf16.gmra.mrb[52].mxu0 %vm464_vm2, %v997_v17  ;;  %v980_v28 = vmax.f32 %v932_v20, 0.0 }
 0x2d1   :  { %v927_v27 = vadd.f32 %v2758_v62, %v926_v26  ;;  %v978_v30 = vmax.f32 %v924_v22, 0.0 }
 0x2d2   :  { %v981_v29 = vmax.f32 %v935_v25, 0.0 }
 0x2d3   :  { %v979_v31 = vmax.f32 %v927_v27, 0.0 }
 0x2d4   :  { %v999_v32 = vpack.c.bf16 %v981_v29, %v980_v28 }
 0x2d5   :  { %v998_v33 = vpack.c.bf16 %v979_v31, %v978_v30  ;;  %v2264_v34 = vpop.f32.mrb[60].mxu1 }
 0x2d6   :  { %v948_v35 = vadd.f32 %v2264_v34, %v2758_v62  ;;  %v939_v36 = vpop.f32.mrb[61].mxu1 }
 0x2d7   :  { %v940_v37 = vadd.f32 %v2758_v62, %v939_v36  ;;  %v2265_v38 = vpop.f32.mrb[62].mxu1  ;;  %2294 = vmatprep.mubr.msk.bf16.mxu0 %vm464_vm2, %v998_v33 }
 0x2d8   :  { %v951_v39 = vadd.f32 %v2265_v38, %v2758_v62  ;;  %v942_v40 = vpop.f32.mrb[63].mxu1  ;;  %2295 = vmatmul.mubr.msk.bf16.gmra.mrb[56].mxu0 %vm464_vm2, %v999_v32  ;;  %v984_v42 = vmax.f32 %v948_v35, 0.0 }
 0x2d9   :  { %v943_v41 = vadd.f32 %v2758_v62, %v942_v40  ;;  %v982_v44 = vmax.f32 %v940_v37, 0.0 }
 0x2da   :  { %v985_v43 = vmax.f32 %v951_v39, 0.0 }
 0x2db   :  { %v983_v45 = vmax.f32 %v943_v41, 0.0 }
 0x2dc   :  { %v1001_v46 = vpack.c.bf16 %v985_v43, %v984_v42 }
 0x2dd   :  { %v1000_v47 = vpack.c.bf16 %v983_v45, %v982_v44 }
 0x2df   :  { %2298 = vmatprep.mubr.msk.bf16.mxu0 %vm464_vm2, %v1000_v47 }
 0x2e0   :  { %2299 = vmatmul.mubr.msk.bf16.gmra.mrb[60].mxu0 %vm464_vm2, %v1001_v46 }
 0x37b   :  { %v2272_v49 = vpop.f32.mrb[32].mxu0 }
 0x37c   :  { %v2814_v50 = vadd.f32 %v2272_v49, %v2811_v48  ;;  %v1107_v62 = vpop.f32.mrb[33].mxu0 }
 0x37d   :  { %v2817_v51 = vadd.f32 %v2811_v48, %v1107_v62  ;;  %v2273_v52 = vpop.f32.mrb[34].mxu0 }
 0x37e   :  { %v2820_v53 = vadd.f32 %v2273_v52, %v2811_v48  ;;  %v1110_v54 = vpop.f32.mrb[35].mxu0  ;;  %v1241_v55 = vsel %vm1234_vm3, %v2814_v50, -inf }
 0x37f   :  { %v2825_v56 = vadd.f32 %v2811_v48, %v1110_v54  ;;  %1242 = vmax.xlane.f32.xlu1 %v1241_v55  ;;  %v1235_v57 = vsel %vm1234_vm3, %v2817_v51, -inf }
 0x380   :  { %1236 = vmax.xlane.f32.xlu0 %v1235_v57  ;;  %v1244_v58 = vsel %vm1234_vm3, %v2820_v53, -inf }
 0x381   :  { %v1238_v60 = vsel %vm1234_vm3, %v2825_v56, -inf }
 0x383   :  { %1245 = vmax.xlane.f32.xlu1 %v1244_v58  ;;  %v2276_v59 = vpop.f32.mrb[36].mxu0 }
 0x384   :  { %v2834_v61 = vadd.f32 %v2276_v59, %v2811_v48  ;;  %v1123_v63 = vpop.f32.mrb[37].mxu0  ;;  %1239 = vmax.xlane.f32.xlu0 %v1238_v60 }
 0x385   :  { %v2277_v0 = vpop.f32.mrb[38].mxu0  ;;  %v2842_v3 = vadd.f32 %v2811_v48, %v1123_v63 }
 0x386   :  { %v2837_v1 = vadd.f32 %v2277_v0, %v2811_v48  ;;  %v1126_v23 = vpop.f32.mrb[39].mxu0  ;;  %v1253_v2 = vsel %vm1234_vm3, %v2834_v61, -inf }
 0x387   :  { %v2845_v4 = vadd.f32 %v2811_v48, %v1126_v23  ;;  %v1247_v7 = vsel %vm1234_vm3, %v2842_v3, -inf }
 0x388   :  { %1254 = vmax.xlane.f32.xlu0 %v1253_v2  ;;  %v1256_v5 = vsel %vm1234_vm3, %v2837_v1, -inf }
 0x389   :  { %1257 = vmax.xlane.f32.xlu1 %v1256_v5  ;;  %v1250_v10 = vsel %vm1234_vm3, %v2845_v4, -inf }
 0x38b   :  { %v2280_v6 = vpop.f32.mrb[40].mxu0 }
 0x38c   :  { %v2852_v8 = vadd.f32 %v2280_v6, %v2811_v48  ;;  %v1139_v9 = vpop.f32.mrb[41].mxu0  ;;  %1248 = vmax.xlane.f32.xlu0 %v1247_v7 }
 0x38d   :  { %v2281_v11 = vpop.f32.mrb[42].mxu0  ;;  %1251 = vmax.xlane.f32.xlu1 %v1250_v10  ;;  %v2862_v15 = vadd.f32 %v2811_v48, %v1139_v9 }
 0x38e   :  { %v2857_v12 = vadd.f32 %v2281_v11, %v2811_v48  ;;  %v1142_v13 = vpop.f32.mrb[43].mxu0  ;;  %v1265_v14 = vsel %vm1234_vm3, %v2852_v8, -inf }
 0x38f   :  { %v2865_v16 = vadd.f32 %v2811_v48, %v1142_v13  ;;  %v1259_v19 = vsel %vm1234_vm3, %v2862_v15, -inf }
 0x390   :  { %1266 = vmax.xlane.f32.xlu0 %v1265_v14  ;;  %v1268_v17 = vsel %vm1234_vm3, %v2857_v12, -inf }
 0x391   :  { %1269 = vmax.xlane.f32.xlu1 %v1268_v17  ;;  %v1262_v22 = vsel %vm1234_vm3, %v2865_v16, -inf }
 0x393   :  { %v2284_v18 = vpop.f32.mrb[44].mxu0 }
 0x394   :  { %v2872_v20 = vadd.f32 %v2284_v18, %v2811_v48  ;;  %v1155_v21 = vpop.f32.mrb[45].mxu0  ;;  %1260 = vmax.xlane.f32.xlu0 %v1259_v19 }
 0x395   :  { %v2285_v24 = vpop.f32.mrb[46].mxu0  ;;  %1263 = vmax.xlane.f32.xlu1 %v1262_v22  ;;  %v2882_v28 = vadd.f32 %v2811_v48, %v1155_v21 }
 0x396   :  { %v2877_v25 = vadd.f32 %v2285_v24, %v2811_v48  ;;  %v1158_v26 = vpop.f32.mrb[47].mxu0  ;;  %v1277_v27 = vsel %vm1234_vm3, %v2872_v20, -inf }
 0x397   :  { %v2885_v29 = vadd.f32 %v2811_v48, %v1158_v26  ;;  %v1271_v32 = vsel %vm1234_vm3, %v2882_v28, -inf }
 0x398   :  { %1278 = vmax.xlane.f32.xlu0 %v1277_v27  ;;  %v1280_v30 = vsel %vm1234_vm3, %v2877_v25, -inf }
 0x399   :  { %1281 = vmax.xlane.f32.xlu1 %v1280_v30  ;;  %v1274_v35 = vsel %vm1234_vm3, %v2885_v29, -inf }
 0x39b   :  { %v2288_v31 = vpop.f32.mrb[48].mxu0 }
 0x39c   :  { %v2892_v33 = vadd.f32 %v2288_v31, %v2811_v48  ;;  %v1171_v34 = vpop.f32.mrb[49].mxu0  ;;  %1272 = vmax.xlane.f32.xlu0 %v1271_v32 }
 0x39d   :  { %v2289_v36 = vpop.f32.mrb[50].mxu0  ;;  %1275 = vmax.xlane.f32.xlu1 %v1274_v35  ;;  %v2902_v40 = vadd.f32 %v2811_v48, %v1171_v34 }
 0x39e   :  { %v2897_v37 = vadd.f32 %v2289_v36, %v2811_v48  ;;  %v1174_v38 = vpop.f32.mrb[51].mxu0  ;;  %v1289_v39 = vsel %vm1234_vm3, %v2892_v33, -inf }
 0x39f   :  { %v2905_v41 = vadd.f32 %v2811_v48, %v1174_v38  ;;  %v1283_v44 = vsel %vm1234_vm3, %v2902_v40, -inf }
 0x3a0   :  { %1290 = vmax.xlane.f32.xlu0 %v1289_v39  ;;  %v1292_v42 = vsel %vm1234_vm3, %v2897_v37, -inf }
 0x3a1   :  { %1293 = vmax.xlane.f32.xlu1 %v1292_v42  ;;  %v1286_v47 = vsel %vm1234_vm3, %v2905_v41, -inf }
 0x3a3   :  { %v2292_v43 = vpop.f32.mrb[52].mxu0 }
 0x3a4   :  { %v2912_v45 = vadd.f32 %v2292_v43, %v2811_v48  ;;  %v1187_v46 = vpop.f32.mrb[53].mxu0  ;;  %1284 = vmax.xlane.f32.xlu0 %v1283_v44 }
 0x3a5   :  { %v2293_v49 = vpop.f32.mrb[54].mxu0  ;;  %1287 = vmax.xlane.f32.xlu1 %v1286_v47  ;;  %v2922_v55 = vadd.f32 %v2811_v48, %v1187_v46 }
 0x3a6   :  { %v2917_v62 = vadd.f32 %v2293_v49, %v2811_v48  ;;  %v1190_v52 = vpop.f32.mrb[55].mxu0  ;;  %v1301_v54 = vsel %vm1234_vm3, %v2912_v45, -inf }
 0x3a7   :  { %v2925_v57 = vadd.f32 %v2811_v48, %v1190_v52  ;;  %v1295_v60 = vsel %vm1234_vm3, %v2922_v55, -inf }
 0x3a8   :  { %1302 = vmax.xlane.f32.xlu0 %v1301_v54  ;;  %v1304_v58 = vsel %vm1234_vm3, %v2917_v62, -inf }
 0x3a9   :  { %1305 = vmax.xlane.f32.xlu1 %v1304_v58  ;;  %v1298_v23 = vsel %vm1234_vm3, %v2925_v57, -inf }
 0x3ab   :  { %v2296_v59 = vpop.f32.mrb[56].mxu0 }
 0x3ac   :  { %v2932_v63 = vadd.f32 %v2296_v59, %v2811_v48  ;;  %v1203_v0 = vpop.f32.mrb[57].mxu0  ;;  %1296 = vmax.xlane.f32.xlu0 %v1295_v60 }
 0x3ad   :  { %v2297_v2 = vpop.f32.mrb[58].mxu0  ;;  %1299 = vmax.xlane.f32.xlu1 %v1298_v23  ;;  %v2942_v9 = vadd.f32 %v2811_v48, %v1203_v0 }
 0x3ae   :  { %v2937_v5 = vadd.f32 %v2297_v2, %v2811_v48  ;;  %v1206_v6 = vpop.f32.mrb[59].mxu0  ;;  %v1313_v7 = vsel %vm1234_vm3, %v2932_v63, -inf }
 0x3af   :  { %v2945_v10 = vadd.f32 %v2811_v48, %v1206_v6  ;;  %v1307_v14 = vsel %vm1234_vm3, %v2942_v9, -inf }
 0x3b0   :  { %1314 = vmax.xlane.f32.xlu0 %v1313_v7  ;;  %v1316_v11 = vsel %vm1234_vm3, %v2937_v5, -inf }
 0x3b1   :  { %1317 = vmax.xlane.f32.xlu1 %v1316_v11  ;;  %v1310_v18 = vsel %vm1234_vm3, %v2945_v10, -inf }
 0x3b3   :  { %v2300_v13 = vpop.f32.mrb[60].mxu0 }
 0x3b4   :  { %v1219_v17 = vpop.f32.mrb[61].mxu0  ;;  %1308 = vmax.xlane.f32.xlu0 %v1307_v14  ;;  %v2957_v24 = vadd.f32 %v2300_v13, %v2811_v48 }
 0x3b5   :  { %v2954_v19 = vadd.f32 %v2811_v48, %v1219_v17  ;;  %v2301_v21 = vpop.f32.mrb[62].mxu0  ;;  %1311 = vmax.xlane.f32.xlu1 %v1310_v18 }
 0x3b6   :  { %v1222_v22 = vpop.f32.mrb[63].mxu0  ;;  %v2965_v30 = vadd.f32 %v2301_v21, %v2811_v48  ;;  %v1325_v32 = vsel %vm1234_vm3, %v2957_v24, -inf }
 0x3b7   :  { %v2960_v26 = vadd.f32 %v2811_v48, %v1222_v22  ;;  %v1319_v27 = vsel %vm1234_vm3, %v2954_v19, -inf }
 0x3b8   :  { %1320 = vmax.xlane.f32.xlu0 %v1319_v27  ;;  %v1328_v34 = vsel %vm1234_vm3, %v2965_v30, -inf }
 0x3b9   :  { %v1322_v31 = vsel %vm1234_vm3, %v2960_v26, -inf }
 0x3ba   :  { %1323 = vmax.xlane.f32.xlu1 %v1322_v31 }
 0x3bc   :  { %1326 = vmax.xlane.f32.xlu0 %v1325_v32 }
 0x3be   :  { %1329 = vmax.xlane.f32.xlu1 %v1328_v34 }
 0x40c   :  { %v1243_v35 = vpop.xlane.xlu1 %1242 }
 0x40d   :  { %v1333_v36 = vsub.f32 %v2814_v50, %v1243_v35  ;;  %v1237_v38 = vpop.xlane.xlu0 %1236 }
 0x40e   :  { %v1331_v39 = vsub.f32 %v2817_v51, %v1237_v38 }
 0x40f   :  { %v1367_v48 = vmul.f32 1.442695, %v1333_v36 }
 0x410   :  { %v1363_v42 = vmul.f32 1.442695, %v1331_v39  ;;  %v1246_v43 = vpop.xlane.xlu1 %1245 }
 0x411   :  { %2342 = vpow2.f32 %v1367_v48  ;;  %v1334_v44 = vsub.f32 %v2820_v53, %v1246_v43  ;;  %v1240_v46 = vpop.xlane.xlu0 %1239 }
 0x412   :  { %v1332_v47 = vsub.f32 %v2825_v56, %v1240_v46  ;;  %2344 = vpow2.f32 %v1363_v42 }
 0x413   :  { %v1369_v49 = vmul.f32 1.442695, %v1334_v44 }
 0x414   :  { %v1365_v52 = vmul.f32 1.442695, %v1332_v47 }
 0x415   :  { %2346 = vpow2.f32 %v1369_v49  ;;  %v1255_v54 = vpop.xlane.xlu0 %1254 }
 0x416   :  { %v1337_v58 = vsub.f32 %v2834_v61, %v1255_v54  ;;  %v1258_v59 = vpop.xlane.xlu1 %1257  ;;  %2348 = vpow2.f32 %v1365_v52 }
 0x417   :  { %v1338_v60 = vsub.f32 %v2837_v1, %v1258_v59 }
 0x418   :  { %v1375_v0 = vmul.f32 1.442695, %v1337_v58 }
 0x419   :  { %v1377_v23 = vmul.f32 1.442695, %v1338_v60  ;;  %v1249_v2 = vpop.xlane.xlu0 %1248 }
 0x41a   :  { %2350 = vpow2.f32 %v1375_v0  ;;  %v1335_v6 = vsub.f32 %v2842_v3, %v1249_v2  ;;  %v1252_v7 = vpop.xlane.xlu1 %1251 }
 0x41b   :  { %v2343_v11 = vpop.eup %2342  ;;  %2352 = vpow2.f32 %v1377_v23  ;;  %v1336_v13 = vsub.f32 %v2845_v4, %v1252_v7 }
 0x41c   :  { %v1371_v14 = vmul.f32 1.442695, %v1335_v6  ;;  %v1433_v17 = vsel %vm1234_vm3, %v2343_v11, 0.0  ;;  %v2345_v18 = vpop.eup %2344 }
 0x41d   :  { %v1373_v21 = vmul.f32 1.442695, %v1336_v13  ;;  %1434 = vadd.xlane.f32.xlu0 %v1433_v17  ;;  %v1267_v22 = vpop.xlane.xlu0 %1266  ;;  %v1427_v38 = vsel %vm1234_vm3, %v2345_v18, 0.0 }
 0x41e   :  { %2354 = vpow2.f32 %v1371_v14  ;;  %v1341_v27 = vsub.f32 %v2852_v8, %v1267_v22  ;;  %v1270_v31 = vpop.xlane.xlu1 %1269 }
 0x41f   :  { %v2347_v32 = vpop.eup %2346  ;;  %2356 = vpow2.f32 %v1373_v21  ;;  %v1342_v34 = vsub.f32 %v2857_v12, %v1270_v31 }
 0x420   :  { %v1383_v35 = vmul.f32 1.442695, %v1341_v27  ;;  %v1436_v36 = vsel %vm1234_vm3, %v2347_v32, 0.0  ;;  %v2349_v39 = vpop.eup %2348 }
 0x421   :  { %v1385_v48 = vmul.f32 1.442695, %v1342_v34  ;;  %1437 = vadd.xlane.f32.xlu1 %v1436_v36  ;;  %1428 = vadd.xlane.f32.xlu0 %v1427_v38  ;;  %v1261_v42 = vpop.xlane.xlu0 %1260  ;;  %v1430_v52 = vsel %vm1234_vm3, %v2349_v39, 0.0 }
 0x422   :  { %2358 = vpow2.f32 %v1383_v35  ;;  %v1339_v43 = vsub.f32 %v2862_v15, %v1261_v42  ;;  %v1264_v44 = vpop.xlane.xlu1 %1263 }
 0x423   :  { %2360 = vpow2.f32 %v1385_v48  ;;  %v1340_v46 = vsub.f32 %v2865_v16, %v1264_v44 }
 0x424   :  { %v2351_v47 = vpop.eup %2350  ;;  %v1379_v49 = vmul.f32 1.442695, %v1339_v43 }
 0x425   :  { %v2353_v54 = vpop.eup %2352  ;;  %v1381_v58 = vmul.f32 1.442695, %v1340_v46  ;;  %1431 = vadd.xlane.f32.xlu1 %v1430_v52  ;;  %v1279_v59 = vpop.xlane.xlu0 %1278  ;;  %v1445_v60 = vsel %vm1234_vm3, %v2351_v47, 0.0 }
 0x426   :  { %2362 = vpow2.f32 %v1379_v49  ;;  %v1345_v0 = vsub.f32 %v2872_v20, %v1279_v59  ;;  %v1282_v23 = vpop.xlane.xlu1 %1281  ;;  %1446 = vadd.xlane.f32.xlu0 %v1445_v60  ;;  %v1448_v11 = vsel %vm1234_vm3, %v2353_v54, 0.0 }
 0x427   :  { %2364 = vpow2.f32 %v1381_v58  ;;  %v1346_v2 = vsub.f32 %v2877_v25, %v1282_v23 }
 0x428   :  { %v2355_v6 = vpop.eup %2354  ;;  %v1391_v7 = vmul.f32 1.442695, %v1345_v0 }
 0x429   :  { %v2357_v13 = vpop.eup %2356  ;;  %v1393_v14 = vmul.f32 1.442695, %v1346_v2  ;;  %1449 = vadd.xlane.f32.xlu1 %v1448_v11  ;;  %v1273_v17 = vpop.xlane.xlu0 %1272  ;;  %v1439_v18 = vsel %vm1234_vm3, %v2355_v6, 0.0 }
 0x42a   :  { %2366 = vpow2.f32 %v1391_v7  ;;  %v1343_v21 = vsub.f32 %v2882_v28, %v1273_v17  ;;  %v1276_v22 = vpop.xlane.xlu1 %1275  ;;  %1440 = vadd.xlane.f32.xlu0 %v1439_v18  ;;  %v1442_v34 = vsel %vm1234_vm3, %v2357_v13, 0.0 }
 0x42b   :  { %2368 = vpow2.f32 %v1393_v14  ;;  %v1344_v27 = vsub.f32 %v2885_v29, %v1276_v22 }
 0x42c   :  { %v2359_v31 = vpop.eup %2358  ;;  %v1387_v32 = vmul.f32 1.442695, %v1343_v21 }
 0x42d   :  { %v2361_v35 = vpop.eup %2360  ;;  %v1389_v36 = vmul.f32 1.442695, %v1344_v27  ;;  %1443 = vadd.xlane.f32.xlu1 %v1442_v34  ;;  %v1291_v38 = vpop.xlane.xlu0 %1290  ;;  %v1457_v39 = vsel %vm1234_vm3, %v2359_v31, 0.0 }
 0x42e   :  { %2370 = vpow2.f32 %v1387_v32  ;;  %v1349_v48 = vsub.f32 %v2892_v33, %v1291_v38  ;;  %v1294_v42 = vpop.xlane.xlu1 %1293  ;;  %1458 = vadd.xlane.f32.xlu0 %v1457_v39  ;;  %v1460_v47 = vsel %vm1234_vm3, %v2361_v35, 0.0 }
 0x42f   :  { %2372 = vpow2.f32 %v1389_v36  ;;  %v1350_v43 = vsub.f32 %v2897_v37, %v1294_v42 }
 0x430   :  { %v2363_v44 = vpop.eup %2362  ;;  %v1399_v46 = vmul.f32 1.442695, %v1349_v48 }
 0x431   :  { %v2365_v49 = vpop.eup %2364  ;;  %v1401_v52 = vmul.f32 1.442695, %v1350_v43  ;;  %1461 = vadd.xlane.f32.xlu1 %v1460_v47  ;;  %v1285_v54 = vpop.xlane.xlu0 %1284  ;;  %v1451_v58 = vsel %vm1234_vm3, %v2363_v44, 0.0 }
 0x432   :  { %2374 = vpow2.f32 %v1399_v46  ;;  %v1347_v59 = vsub.f32 %v2902_v40, %v1285_v54  ;;  %v1288_v60 = vpop.xlane.xlu1 %1287  ;;  %1452 = vadd.xlane.f32.xlu0 %v1451_v58  ;;  %v1454_v6 = vsel %vm1234_vm3, %v2365_v49, 0.0 }
 0x433   :  { %2376 = vpow2.f32 %v1401_v52  ;;  %v1348_v0 = vsub.f32 %v2905_v41, %v1288_v60 }
 0x434   :  { %v2367_v23 = vpop.eup %2366  ;;  %v1395_v2 = vmul.f32 1.442695, %v1347_v59 }
 0x435   :  { %v2369_v7 = vpop.eup %2368  ;;  %v1397_v11 = vmul.f32 1.442695, %v1348_v0  ;;  %1455 = vadd.xlane.f32.xlu1 %v1454_v6  ;;  %v1303_v13 = vpop.xlane.xlu0 %1302  ;;  %v1469_v14 = vsel %vm1234_vm3, %v2367_v23, 0.0 }
 0x436   :  { %2378 = vpow2.f32 %v1395_v2  ;;  %v1353_v17 = vsub.f32 %v2912_v45, %v1303_v13  ;;  %v1306_v18 = vpop.xlane.xlu1 %1305  ;;  %1470 = vadd.xlane.f32.xlu0 %v1469_v14  ;;  %v1472_v31 = vsel %vm1234_vm3, %v2369_v7, 0.0 }
 0x437   :  { %2380 = vpow2.f32 %v1397_v11  ;;  %v1354_v21 = vsub.f32 %v2917_v62, %v1306_v18 }
 0x438   :  { %v2371_v22 = vpop.eup %2370  ;;  %v1407_v27 = vmul.f32 1.442695, %v1353_v17 }
 0x439   :  { %v2373_v32 = vpop.eup %2372  ;;  %v1409_v34 = vmul.f32 1.442695, %v1354_v21  ;;  %1473 = vadd.xlane.f32.xlu1 %v1472_v31  ;;  %v1297_v35 = vpop.xlane.xlu0 %1296  ;;  %v1463_v36 = vsel %vm1234_vm3, %v2371_v22, 0.0 }
 0x43a   :  { %2382 = vpow2.f32 %v1407_v27  ;;  %v1351_v38 = vsub.f32 %v2922_v55, %v1297_v35  ;;  %v1300_v39 = vpop.xlane.xlu1 %1299  ;;  %1464 = vadd.xlane.f32.xlu0 %v1463_v36  ;;  %v1466_v44 = vsel %vm1234_vm3, %v2373_v32, 0.0 }
 0x43b   :  { %2384 = vpow2.f32 %v1409_v34  ;;  %v1352_v48 = vsub.f32 %v2925_v57, %v1300_v39 }
 0x43c   :  { %v2375_v42 = vpop.eup %2374  ;;  %v1403_v43 = vmul.f32 1.442695, %v1351_v38 }
 0x43d   :  { %v2377_v46 = vpop.eup %2376  ;;  %v1405_v47 = vmul.f32 1.442695, %v1352_v48  ;;  %1467 = vadd.xlane.f32.xlu1 %v1466_v44  ;;  %v1315_v49 = vpop.xlane.xlu0 %1314  ;;  %v1481_v52 = vsel %vm1234_vm3, %v2375_v42, 0.0 }
 0x43e   :  { %2386 = vpow2.f32 %v1403_v43  ;;  %v1357_v54 = vsub.f32 %v2932_v63, %v1315_v49  ;;  %v1318_v58 = vpop.xlane.xlu1 %1317  ;;  %1482 = vadd.xlane.f32.xlu0 %v1481_v52  ;;  %v1484_v23 = vsel %vm1234_vm3, %v2377_v46, 0.0 }
 0x43f   :  { %2388 = vpow2.f32 %v1405_v47  ;;  %v1358_v59 = vsub.f32 %v2937_v5, %v1318_v58 }
 0x440   :  { %v2379_v60 = vpop.eup %2378  ;;  %v1415_v0 = vmul.f32 1.442695, %v1357_v54 }
 0x441   :  { %v2381_v2 = vpop.eup %2380  ;;  %v1417_v6 = vmul.f32 1.442695, %v1358_v59  ;;  %1485 = vadd.xlane.f32.xlu1 %v1484_v23  ;;  %v1309_v7 = vpop.xlane.xlu0 %1308  ;;  %v1475_v11 = vsel %vm1234_vm3, %v2379_v60, 0.0 }
 0x442   :  { %2390 = vpow2.f32 %v1415_v0  ;;  %v1355_v13 = vsub.f32 %v2942_v9, %v1309_v7  ;;  %v1312_v14 = vpop.xlane.xlu1 %1311  ;;  %1476 = vadd.xlane.f32.xlu0 %v1475_v11  ;;  %v1478_v22 = vsel %vm1234_vm3, %v2381_v2, 0.0 }
 0x443   :  { %2392 = vpow2.f32 %v1417_v6  ;;  %v1356_v17 = vsub.f32 %v2945_v10, %v1312_v14 }
 0x444   :  { %v2383_v18 = vpop.eup %2382  ;;  %v1411_v21 = vmul.f32 1.442695, %v1355_v13 }
 0x445   :  { %v2385_v27 = vpop.eup %2384  ;;  %v1413_v31 = vmul.f32 1.442695, %v1356_v17  ;;  %1479 = vadd.xlane.f32.xlu1 %v1478_v22  ;;  %v1321_v32 = vpop.xlane.xlu0 %1320  ;;  %v1493_v34 = vsel %vm1234_vm3, %v2383_v18, 0.0 }
 0x446   :  { %2394 = vpow2.f32 %v1411_v21  ;;  %v1359_v35 = vsub.f32 %v2954_v19, %v1321_v32  ;;  %1494 = vadd.xlane.f32.xlu0 %v1493_v34  ;;  %v1496_v42 = vsel %vm1234_vm3, %v2385_v27, 0.0 }
 0x447   :  { %2396 = vpow2.f32 %v1413_v31  ;;  %v1324_v36 = vpop.xlane.xlu1 %1323 }
 0x448   :  { %v2387_v38 = vpop.eup %2386  ;;  %v1419_v39 = vmul.f32 1.442695, %v1359_v35  ;;  %v1360_v48 = vsub.f32 %v2960_v26, %v1324_v36  ;;  %v2340_v35 = vld [vmem:[%s3269_s9] sm:$0xff]   ;;  %v2494_v36 = vmov 0.0  }
 0x449   :  { %v2389_v43 = vpop.eup %2388  ;;  %1497 = vadd.xlane.f32.xlu1 %v1496_v42  ;;  %v1327_v44 = vpop.xlane.xlu0 %1326  ;;  %v1487_v46 = vsel %vm1234_vm3, %v2387_v38, 0.0  ;;  %2302 = vmatprep.subr.bf16.mxu1 %v2494_v36  ;;  %v2341_v38 = vld [vmem:[%s3269_s9 + $0x8] sm:$0xff]   ;;  %s2496_s9 = smov 64  }
 0x44a   :  { %2398 = vpow2.f32 %v1419_v39  ;;  %v1421_v47 = vmul.f32 1.442695, %v1360_v48  ;;  %v1361_v49 = vsub.f32 %v2957_v24, %v1327_v44  ;;  %1488 = vadd.xlane.f32.xlu0 %v1487_v46  ;;  %v1490_v60 = vsel %vm1234_vm3, %v2389_v43, 0.0  ;;  %2306 = vmatprep.mubr.msk.bf16.mxu1 %vm2495_vm4, %v2494_v36 }
 0x44b   :  { %v1330_v52 = vpop.xlane.xlu1 %1329  ;;  %2303 = vmatpush3.bf16.msra.mxu1 %v2340_v35 }
 0x44c   :  { %v2391_v54 = vpop.eup %2390  ;;  %2400 = vpow2.f32 %v1421_v47  ;;  %v1423_v58 = vmul.f32 1.442695, %v1361_v49  ;;  %v1362_v59 = vsub.f32 %v2965_v30, %v1330_v52  ;;  %2304 = vmatprep.subr.bf16.mxu1 %v2494_v36 }
 0x44d   :  { %v2393_v0 = vpop.eup %2392  ;;  %1491 = vadd.xlane.f32.xlu1 %v1490_v60  ;;  %v1505_v23 = vsel %vm1234_vm3, %v2391_v54, 0.0 }
 0x44e   :  { %2402 = vpow2.f32 %v1423_v58  ;;  %v1425_v2 = vmul.f32 1.442695, %v1362_v59  ;;  %1506 = vadd.xlane.f32.xlu0 %v1505_v23  ;;  %v1508_v7 = vsel %vm1234_vm3, %v2393_v0, 0.0 }
 0x44f   :  { %2305 = vmatpush3.bf16.msra.mxu1 %v2341_v38 }
 0x450   :  { %v2395_v6 = vpop.eup %2394  ;;  %2404 = vpow2.f32 %v1425_v2 }
 0x451   :  { %v2397_v11 = vpop.eup %2396  ;;  %1509 = vadd.xlane.f32.xlu1 %v1508_v7  ;;  %v1499_v13 = vsel %vm1234_vm3, %v2395_v6, 0.0 }
 0x452   :  { %1500 = vadd.xlane.f32.xlu0 %v1499_v13  ;;  %v1502_v17 = vsel %vm1234_vm3, %v2397_v11, 0.0 }
 0x454   :  { %v2399_v14 = vpop.eup %2398 }
 0x455   :  { %1503 = vadd.xlane.f32.xlu1 %v1502_v17  ;;  %v1511_v18 = vsel %vm1234_vm3, %v2399_v14, 0.0 }
 0x456   :  { %v2401_v21 = vpop.eup %2400  ;;  %1512 = vadd.xlane.f32.xlu0 %v1511_v18 }
 0x457   :  { %v1514_v22 = vsel %vm1234_vm3, %v2401_v21, 0.0 }
 0x458   :  { %v2403_v27 = vpop.eup %2402 }
 0x459   :  { %1515 = vadd.xlane.f32.xlu1 %v1514_v22  ;;  %v1517_v31 = vsel %vm1234_vm3, %v2403_v27, 0.0 }
 0x45a   :  { %v2405_v32 = vpop.eup %2404  ;;  %1518 = vadd.xlane.f32.xlu0 %v1517_v31 }
 0x45b   :  { %v1520_v34 = vsel %vm1234_vm3, %v2405_v32, 0.0 }
 0x45d   :  { %1521 = vadd.xlane.f32.xlu1 %v1520_v34 }
 0x4aa   :  { %v1435_v39 = vpop.xlane.xlu0 %1434 }
 0x4ab   :  { %2406 = vrcp.f32 %v1435_v39 }
 0x4ae   :  { %v1438_v48 = vpop.xlane.xlu1 %1437  ;;  %v1429_v42 = vpop.xlane.xlu0 %1428 }
 0x4af   :  { %2408 = vrcp.f32 %v1438_v48 }
 0x4b2   :  { %v1432_v43 = vpop.xlane.xlu1 %1431 }
 0x4b3   :  { %v1447_v44 = vpop.xlane.xlu0 %1446  ;;  %2410 = vrcp.f32 %v1432_v43 }
 0x4b4   :  { %2412 = vrcp.f32 %v1429_v42 }
 0x4b5   :  { %v2407_v46 = vpop.eup %2406 }
 0x4b6   :  { %v1557_v47 = vmul.f32 %v2407_v46, %v1435_v39  ;;  %v1450_v49 = vpop.xlane.xlu1 %1449 }
 0x4b7   :  { %v1441_v52 = vpop.xlane.xlu0 %1440  ;;  %2414 = vrcp.f32 %v1450_v49 }
 0x4b8   :  { %v1589_v54 = vmul.f32 0.015625, %v1557_v47  ;;  %2416 = vrcp.f32 %v1447_v44 }
 0x4b9   :  { %v2409_v58 = vpop.eup %2408 }
 0x4ba   :  { %v1558_v59 = vmul.f32 %v2409_v58, %v1438_v48  ;;  %v1444_v60 = vpop.xlane.xlu1 %1443  ;;  %v1621_v23 = vmul.f32 %v1589_v54, %v2814_v50 }
 0x4bb   :  { %v3043_v0 = vpop.xlane.xlu0 %1458  ;;  %2418 = vrcp.f32 %v1444_v60 }
 0x4bc   :  { %v1590_v2 = vmul.f32 0.015625, %v1558_v59  ;;  %v1661_v17 = vsel %vm1651_vm5, %v1621_v23, 0.0  ;;  %2420 = vrcp.f32 %v1441_v52 }
 0x4bd   :  { %v2411_v6 = vpop.eup %2410  ;;  %2422 = vrcp.f32 %v3043_v0 }
 0x4be   :  { %v1622_v7 = vmul.f32 %v1590_v2, %v2820_v53  ;;  %v3047_v11 = vpop.xlane.xlu1 %1461  ;;  %v2413_v14 = vpop.eup %2412  ;;  %v1556_v22 = vmul.f32 %v2411_v6, %v1432_v43 }
 0x4bf   :  { %v3049_v13 = vpop.xlane.xlu0 %1452  ;;  %v1555_v27 = vmul.f32 %v2413_v14, %v1429_v42  ;;  %2424 = vrcp.f32 %v3047_v11 }
 0x4c0   :  { %v1662_v18 = vsel %vm1651_vm5, %v1622_v7, 0.0  ;;  %v1588_v53 = vmul.f32 0.015625, %v1556_v22  ;;  %2426 = vrcp.f32 %v3049_v13 }
 0x4c1   :  { %v1663_v21 = vadd.f32 %v1662_v18, %v1661_v17  ;;  %v1587_v34 = vmul.f32 0.015625, %v1555_v27  ;;  %v2415_v36 = vpop.eup %2414 }
 0x4c2   :  { %v3053_v50 = vpop.xlane.xlu1 %1455  ;;  %v1620_v38 = vmul.f32 %v1588_v53, %v2825_v56  ;;  %v2417_v39 = vpop.eup %2416  ;;  %v1562_v46 = vmul.f32 %v2415_v36, %v1450_v49 }
 0x4c3   :  { %v3055_v31 = vpop.xlane.xlu0 %1470  ;;  %v1619_v43 = vmul.f32 %v1587_v34, %v2817_v51  ;;  %v1664_v54 = vrot.slane %v1663_v21, 4  ;;  %v1561_v59 = vmul.f32 %v2417_v39, %v1447_v44  ;;  %2428 = vrcp.f32 %v3053_v50 }
 0x4c4   :  { %v1653_v58 = vsel %vm1651_vm5, %v1620_v38, 0.0  ;;  %v1594_v6 = vmul.f32 0.015625, %v1562_v46  ;;  %2430 = vrcp.f32 %v3055_v31 }
 0x4c5   :  { %v2419_v47 = vpop.eup %2418  ;;  %v1652_v56 = vsel %vm1651_vm5, %v1619_v43, 0.0  ;;  %v1665_v49 = vadd.f32 %v1664_v54, %v1663_v21  ;;  %v1593_v17 = vmul.f32 0.015625, %v1561_v59 }
 0x4c6   :  { %v3057_v32 = vpop.xlane.xlu1 %1473  ;;  %v2421_v23 = vpop.eup %2420  ;;  %v1560_v7 = vmul.f32 %v2419_v47, %v1444_v60  ;;  %v1654_v14 = vadd.f32 %v1653_v58, %v1652_v56  ;;  %v1626_v44 = vmul.f32 %v1594_v6, %v2837_v1 }
 0x4c7   :  { %v3059_v35 = vpop.xlane.xlu0 %1464  ;;  %v1559_v18 = vmul.f32 %v2421_v23, %v1441_v52  ;;  %v1666_v34 = vrot.slane %v1665_v49, 2  ;;  %v2423_v60 = vpop.eup %2422  ;;  %v1625_v38 = vmul.f32 %v1593_v17, %v2834_v61  ;;  %2432 = vrcp.f32 %v3057_v32 }
 0x4c8   :  { %v1592_v27 = vmul.f32 0.015625, %v1560_v7  ;;  %v1655_v36 = vrot.slane %v1654_v14, 4  ;;  %v1680_v52 = vsel %vm1651_vm5, %v1626_v44, 0.0  ;;  %v1565_v58 = vmul.f32 %v2423_v60, %v3043_v0 }
 0x4c9   :  { %v1591_v21 = vmul.f32 0.015625, %v1559_v18  ;;  %v2425_v39 = vpop.eup %2424  ;;  %v1667_v47 = vadd.f32 %v1666_v34, %v1665_v49  ;;  %v1679_v61 = vsel %vm1651_vm5, %v1625_v38, 0.0 }
 0x4ca   :  { %v3062_v48 = vpop.xlane.xlu1 %1467  ;;  %v1624_v46 = vmul.f32 %v1592_v27, %v2845_v4  ;;  %v1656_v54 = vadd.f32 %v1655_v36, %v1654_v14  ;;  %v1566_v23 = vmul.f32 %v2425_v39, %v3047_v11  ;;  %v2427_v56 = vpop.eup %2426  ;;  %v1681_v4 = vadd.f32 %v1680_v52, %v1679_v61 }
 0x4cb   :  { %v3066_v42 = vpop.xlane.xlu0 %1482  ;;  %v1623_v59 = vmul.f32 %v1591_v21, %v2842_v3  ;;  %v1668_v14 = vrot.slane %v1667_v47, 1  ;;  %v1597_v3 = vmul.f32 0.015625, %v1565_v58  ;;  %v1563_v44 = vmul.f32 %v2427_v56, %v3049_v13 }
 0x4cc   :  { %v1671_v7 = vsel %vm1651_vm5, %v1624_v46, 0.0  ;;  %v1657_v17 = vrot.slane %v1656_v54, 2  ;;  %v1598_v18 = vmul.f32 0.015625, %v1566_v23  ;;  %v1682_v27 = vrot.slane %v1681_v4, 4 }
 0x4cd   :  { %v2429_v49 = vpop.eup %2428  ;;  %v1670_v11 = vsel %vm1651_vm5, %v1623_v59, 0.0  ;;  %v3115_v39 = vadd.f32 %v1668_v14, %v1667_v47  ;;  %v1629_v13 = vmul.f32 %v1597_v3, %v2852_v8  ;;  %v1595_v61 = vmul.f32 0.015625, %v1563_v44 }
 0x4ce   :  { %v3070_v2 = vpop.xlane.xlu1 %1485  ;;  %v1672_v34 = vadd.f32 %v1671_v7, %v1670_v11  ;;  %v2431_v60 = vpop.eup %2430  ;;  %v1564_v38 = vmul.f32 %v2429_v49, %v3053_v50  ;;  %v1658_v52 = vadd.f32 %v1657_v17, %v1656_v54  ;;  %v1630_v58 = vmul.f32 %v1598_v18, %v2857_v12 }
 0x4cf   :  { %v3073_v51 = vpop.xlane.xlu0 %1476  ;;  %2434 = vrcp.f32 %v3070_v2  ;;  %v3121_v23 = vadd.f32 %v1682_v27, %v1681_v4  ;;  %v1569_v56 = vmul.f32 %v2431_v60, %v3055_v31  ;;  %v1697_v12 = vsel %vm1651_vm5, %v1629_v13, 0.0 }
 0x4d0   :  { %2436 = vrcp.f32 %v3066_v42  ;;  %v1673_v50 = vrot.slane %v1672_v34, 4  ;;  %v1596_v54 = vmul.f32 0.015625, %v1564_v38  ;;  %v1659_v49 = vrot.slane %v1658_v52, 1 }
 0x4d1   :  { %2438 = vrcp.f32 %v3073_v51  ;;  %v2433_v46 = vpop.eup %2432  ;;  %v1698_v17 = vsel %vm1651_vm5, %v1630_v58, 0.0  ;;  %v1627_v31 = vmul.f32 %v1595_v61, %v2862_v15  ;;  %v1684_v27 = vrot.slane %v3121_v23, 2 }
 0x4d2   :  { %v3077_v22 = vpop.xlane.xlu1 %1479  ;;  %2440 = vrcp.f32 %v3062_v48  ;;  %v3138_v60 = vadd.f32 %v1673_v50, %v1672_v34  ;;  %v1601_v38 = vmul.f32 0.015625, %v1569_v56  ;;  %v1628_v8 = vmul.f32 %v1596_v54, %v2865_v16 }
 0x4d3   :  { %v3080_v53 = vpop.xlane.xlu0 %1494  ;;  %2442 = vrcp.f32 %v3077_v22  ;;  %v3147_v61 = vadd.f32 %v1698_v17, %v1697_v12  ;;  %v1688_v50 = vsel %vm1651_vm5, %v1627_v31, 0.0 }
 0x4d4   :  { %2444 = vrcp.f32 %v3059_v35  ;;  %v1689_v12 = vsel %vm1651_vm5, %v1628_v8, 0.0 }
 0x4d5   :  { %2446 = vrcp.f32 %v3080_v53 }
 0x4d6   :  { %v3084_v43 = vpop.xlane.xlu1 %1497 }
 0x4d7   :  { %v3089_v1 = vpop.xlane.xlu0 %1488  ;;  %2448 = vrcp.f32 %v3084_v43 }
 0x4d8   :  { %2450 = vrcp.f32 %v3089_v1 }
 0x4d9   :  { %v2435_v59 = vpop.eup %2434 }
 0x4da   :  { %v3098_v6 = vpop.xlane.xlu1 %1491  ;;  %v2437_v47 = vpop.eup %2436  ;;  %v1574_v3 = vmul.f32 %v2435_v59, %v3070_v2 }
 0x4db   :  { %v3102_v0 = vpop.xlane.xlu0 %1506  ;;  %2452 = vrcp.f32 %v3098_v6  ;;  %v2439_v7 = vpop.eup %2438  ;;  %v1573_v58 = vmul.f32 %v2437_v47, %v3066_v42  ;;  %v1633_v47 = vmul.f32 %v1601_v38, %v2872_v20 }
 0x4dc   :  { %2454 = vrcp.f32 %v3102_v0  ;;  %v2441_v4 = vpop.eup %2440  ;;  %v1571_v11 = vmul.f32 %v2439_v7, %v3073_v51  ;;  %v3145_v51 = vadd.f32 %v1659_v49, %v1658_v52  ;;  %v1606_v56 = vmul.f32 0.015625, %v1574_v3 }
 0x4dd   :  { %v2443_v44 = vpop.eup %2442  ;;  %v1568_v34 = vmul.f32 %v2441_v4, %v3062_v48  ;;  %v1570_v52 = vmul.f32 %v2433_v46, %v3057_v32  ;;  %v1605_v17 = vmul.f32 0.015625, %v1573_v58 }
 0x4de   :  { %v3109_v36 = vpop.xlane.xlu1 %1509  ;;  %v2445_v13 = vpop.eup %2444  ;;  %v1572_v15 = vmul.f32 %v2443_v44, %v3077_v22  ;;  %v1603_v16 = vmul.f32 0.015625, %v1571_v11  ;;  %v1675_v22 = vrot.slane %v3138_v60, 2 }
 0x4df   :  { %v3113_v21 = vpop.xlane.xlu0 %1500  ;;  %2456 = vrcp.f32 %v3109_v36  ;;  %v2447_v2 = vpop.eup %2446  ;;  %v1567_v4 = vmul.f32 %v2445_v13, %v3059_v35  ;;  %v1600_v11 = vmul.f32 0.015625, %v1568_v34  ;;  %v3167_v35 = vadd.f32 %v1689_v12, %v1688_v50 }
 0x4e0   :  { %2458 = vrcp.f32 %v3113_v21  ;;  %v1604_v54 = vmul.f32 0.015625, %v1572_v15  ;;  %v1577_v20 = vmul.f32 %v2447_v2, %v3080_v53  ;;  %v1635_v46 = vmul.f32 %v1603_v16, %v2902_v40 }
 0x4e1   :  { %v2449_v59 = vpop.eup %2448  ;;  %v1602_v15 = vmul.f32 0.015625, %v1570_v52  ;;  %v1632_v16 = vmul.f32 %v1600_v11, %v2885_v29 }
 0x4e2   :  { %v3129_v14 = vpop.xlane.xlu1 %1503  ;;  %v2451_v42 = vpop.eup %2450  ;;  %v1578_v7 = vmul.f32 %v2449_v59, %v3084_v43  ;;  %v1636_v44 = vmul.f32 %v1604_v54, %v2905_v41  ;;  %v1638_v43 = vmul.f32 %v1606_v56, %v2897_v37  ;;  %v1637_v41 = vmul.f32 %v1605_v17, %v2892_v33 }
 0x4e3   :  { %v3135_v18 = vpop.xlane.xlu0 %1512  ;;  %2460 = vrcp.f32 %v3129_v14  ;;  %v1575_v31 = vmul.f32 %v2451_v42, %v3089_v1  ;;  %v3170_v1 = vsel %vm1651_vm5, %v1633_v47, 0.0  ;;  %v1609_v34 = vmul.f32 0.015625, %v1577_v20 }
 0x4e4   :  { %2462 = vrcp.f32 %v3135_v18  ;;  %v1610_v13 = vmul.f32 0.015625, %v1578_v7  ;;  %v1725_v2 = vsel %vm1651_vm5, %v1636_v44, 0.0  ;;  %v1599_v56 = vmul.f32 0.015625, %v1567_v4 }
 0x4e5   :  { %v2453_v48 = vpop.eup %2452  ;;  %v1607_v38 = vmul.f32 0.015625, %v1575_v31  ;;  %v1734_v54 = vsel %vm1651_vm5, %v1638_v43, 0.0  ;;  %v1724_v33 = vsel %vm1651_vm5, %v1635_v46, 0.0  ;;  %v1641_v12 = vmul.f32 %v1609_v34, %v2912_v45 }
 0x4e6   :  { %v3156_v49 = vpop.xlane.xlu1 %1515  ;;  %v2455_v3 = vpop.eup %2454  ;;  %v1576_v32 = vmul.f32 %v2453_v48, %v3098_v6  ;;  %v1726_v7 = vadd.f32 %v1725_v2, %v1724_v33  ;;  %v1707_v44 = vsel %vm1651_vm5, %v1632_v16, 0.0 }
 0x4e7   :  { %2464 = vrcp.f32 %v3156_v49  ;;  %v1639_v53 = vmul.f32 %v1607_v38, %v2922_v55  ;;  %v1581_v6 = vmul.f32 %v2455_v3, %v3102_v0  ;;  %v1642_v0 = vmul.f32 %v1610_v13, %v2917_v62  ;;  %v3184_v52 = vpop.xlane.xlu0 %1518 }
 0x4e8   :  { %v1608_v58 = vmul.f32 0.015625, %v1576_v32  ;;  %v1631_v62 = vmul.f32 %v1599_v56, %v2882_v28  ;;  %2466 = vrcp.f32 %v3184_v52  ;;  %v1727_v43 = vrot.slane %v1726_v7, 4 }
 0x4e9   :  { %v2457_v8 = vpop.eup %2456  ;;  %v1742_v48 = vsel %vm1651_vm5, %v1639_v53, 0.0  ;;  %v1613_v29 = vmul.f32 0.015625, %v1581_v6  ;;  %v1752_v20 = vsel %vm1651_vm5, %v1642_v0, 0.0  ;;  %v1691_v38 = vrot.slane %v3167_v35, 4 }
 0x4ea   :  { %v1582_v37 = vmul.f32 %v2457_v8, %v3109_v36  ;;  %v2459_v40 = vpop.eup %2458  ;;  %v1640_v59 = vmul.f32 %v1608_v58, %v2925_v57  ;;  %v1733_v57 = vsel %vm1651_vm5, %v1637_v41, 0.0 }
 0x4eb   :  { %v1579_v47 = vmul.f32 %v2459_v40, %v3113_v21  ;;  %v1735_v3 = vadd.f32 %v1734_v54, %v1733_v57  ;;  %v1634_v21 = vmul.f32 %v1602_v15, %v2877_v25  ;;  %v1645_v46 = vmul.f32 %v1613_v29, %v2932_v63 }
 0x4ec   :  { %v1743_v36 = vsel %vm1651_vm5, %v1640_v59, 0.0  ;;  %v1614_v42 = vmul.f32 0.015625, %v1582_v37  ;;  %v1706_v25 = vsel %vm1651_vm5, %v1631_v62, 0.0  ;;  %v1522_v37 = vpop.xlane.xlu1 %1521  ;;  %v1728_v40 = vadd.f32 %v1727_v43, %v1726_v7 }
 0x4ed   :  { %v2461_v50 = vpop.eup %2460  ;;  %v1744_v4 = vadd.f32 %v1743_v36, %v1742_v48  ;;  %v1611_v17 = vmul.f32 0.015625, %v1579_v47  ;;  %v1736_v58 = vrot.slane %v1735_v3, 4  ;;  %v1708_v6 = vadd.f32 %v1707_v44, %v1706_v25 }
 0x4ee   :  { %v2463_v55 = vpop.eup %2462  ;;  %v1580_v31 = vmul.f32 %v2461_v50, %v3129_v14  ;;  %v1646_v32 = vmul.f32 %v1614_v42, %v2937_v5  ;;  %v1716_v5 = vsel %vm1651_vm5, %v1634_v21, 0.0  ;;  %v1769_v15 = vsel %vm1651_vm5, %v1645_v46, 0.0 }
 0x4ef   :  { %v1583_v11 = vmul.f32 %v2463_v55, %v3135_v18  ;;  %v1643_v14 = vmul.f32 %v1611_v17, %v2942_v9  ;;  %v1751_v18 = vsel %vm1651_vm5, %v1641_v12, 0.0  ;;  %v1745_v8 = vrot.slane %v1744_v4, 4 }
 0x4f0   :  { %v1612_v28 = vmul.f32 0.015625, %v1580_v31  ;;  %v1753_v41 = vadd.f32 %v1752_v20, %v1751_v18  ;;  %v1770_v63 = vsel %vm1651_vm5, %v1646_v32, 0.0  ;;  %v1737_v16 = vadd.f32 %v1736_v58, %v1735_v3 }
 0x4f1   :  { %v2465_v45 = vpop.eup %2464  ;;  %v1615_v13 = vmul.f32 0.015625, %v1583_v11  ;;  %v1760_v2 = vsel %vm1651_vm5, %v1643_v14, 0.0  ;;  %v1746_v59 = vadd.f32 %v1745_v8, %v1744_v4  ;;  %v1771_v33 = vadd.f32 %v1770_v63, %v1769_v15 }
 0x4f2   :  { %v1644_v53 = vmul.f32 %v1612_v28, %v2945_v10  ;;  %v1584_v9 = vmul.f32 %v2465_v45, %v3156_v49  ;;  %v1754_v54 = vrot.slane %v1753_v41, 4  ;;  %2468 = vrcp.f32 %v1522_v37  ;;  %v2467_v42 = vpop.eup %2466 }
 0x4f3   :  { %v1647_v56 = vmul.f32 %v1615_v13, %v2954_v19  ;;  %v1692_v55 = vadd.f32 %v1691_v38, %v3167_v35  ;;  %v1709_v49 = vrot.slane %v1708_v6, 4  ;;  %v1676_v47 = vadd.f32 %v1675_v22, %v3138_v60 }
 0x4f4   :  { %v1761_v34 = vsel %vm1651_vm5, %v1644_v53, 0.0  ;;  %v1616_v10 = vmul.f32 0.015625, %v1584_v9  ;;  %v1700_v57 = vrot.slane %v3147_v61, 4  ;;  %v1717_v19 = vadd.f32 %v1716_v5, %v3170_v1 }
 0x4f5   :  { %v1762_v50 = vadd.f32 %v1761_v34, %v1760_v2  ;;  %v1729_v7 = vrot.slane %v1728_v40, 2  ;;  %v1747_v48 = vrot.slane %v1746_v59, 2  ;;  %v1778_v12 = vsel %vm1651_vm5, %v1647_v56, 0.0 }
 0x4f6   :  { %v1648_v36 = vmul.f32 %v1616_v10, %v2960_v26  ;;  %v1738_v4 = vrot.slane %v1737_v16, 2  ;;  %v1755_v17 = vadd.f32 %v1754_v54, %v1753_v41  ;;  %v1772_v31 = vrot.slane %v1771_v33, 4 }
 0x4f7   :  { %v1763_v0 = vrot.slane %v1762_v50, 4  ;;  %v1685_v62 = vadd.f32 %v1684_v27, %v3121_v23  ;;  %v1693_v60 = vrot.slane %v1692_v55, 2  ;;  %v1710_v22 = vadd.f32 %v1709_v49, %v1708_v6 }
 0x4f8   :  { %v1779_v35 = vsel %vm1651_vm5, %v1648_v36, 0.0  ;;  %v1585_v3 = vmul.f32 %v2467_v42, %v3184_v52  ;;  %v1701_v1 = vadd.f32 %v1700_v57, %v3147_v61  ;;  %v1718_v11 = vrot.slane %v1717_v19, 4 }
 0x4f9   :  { %v1764_v29 = vadd.f32 %v1763_v0, %v1762_v50  ;;  %v1780_v26 = vadd.f32 %v1779_v35, %v1778_v12  ;;  %v1730_v21 = vadd.f32 %v1729_v7, %v1728_v40  ;;  %v3272_v20 = vpack.c.bf16 %v3115_v39, %v3115_v39 }
 0x4fa   :  { %v1677_v45 = vrot.slane %v1676_v47, 1  ;;  %v1748_v43 = vadd.f32 %v1747_v48, %v1746_v59  ;;  %v1739_v14 = vadd.f32 %v1738_v4, %v1737_v16  ;;  %v1756_v28 = vrot.slane %v1755_v17, 2 }
 0x4fb   :  { %v1781_v44 = vrot.slane %v1780_v26, 4  ;;  %v3227_v32 = vunpack.c.l.b16 %v3272_v20  ;;  %v1765_v46 = vrot.slane %v1764_v29, 2  ;;  %v1773_v23 = vadd.f32 %v1772_v31, %v1771_v33 }
 0x4fc   :  { %v1796_v52 = vpack.c.bf16 %v3145_v51, %v3145_v51  ;;  %v1694_v38 = vadd.f32 %v1693_v60, %v1692_v55  ;;  %v1711_v61 = vrot.slane %v1710_v22, 2  ;;  %v1617_v18 = vmul.f32 0.015625, %v1585_v3  ;;  %v2469_v8 = vpop.eup %2468 }
 0x4fd   :  { %v1782_v27 = vadd.f32 %v1781_v44, %v1780_v26  ;;  %v1686_v13 = vrot.slane %v1685_v62, 1  ;;  %v1702_v25 = vrot.slane %v1701_v1, 2  ;;  %v1719_v58 = vadd.f32 %v1718_v11, %v1717_v19 }
 0x4fe   :  { %v1731_v39 = vrot.slane %v1730_v21, 1  ;;  %v1749_v41 = vrot.slane %v1748_v43, 1  ;;  %v1766_v53 = vadd.f32 %v1765_v46, %v1764_v29  ;;  %v1586_v6 = vmul.f32 %v2469_v8, %v1522_v37 }
 0x4ff   :  { %v1783_v5 = vrot.slane %v1782_v27, 2  ;;  %v1678_v63 = vadd.f32 %v1677_v45, %v1676_v47  ;;  %v1740_v9 = vrot.slane %v1739_v14, 1  ;;  %v1757_v40 = vadd.f32 %v1756_v28, %v1755_v17 }
 0x500   :  { %v1774_v15 = vrot.slane %v1773_v23, 2  ;;  %v1695_v2 = vrot.slane %v1694_v38, 1  ;;  %v1712_v34 = vadd.f32 %v1711_v61, %v1710_v22  ;;  %v1649_v51 = vmul.f32 %v1617_v18, %v2957_v24 }
 0x501   :  { %v1618_v59 = vmul.f32 0.015625, %v1586_v6  ;;  %v1687_v50 = vadd.f32 %v1686_v13, %v1685_v62  ;;  %v1703_v56 = vadd.f32 %v1702_v25, %v1701_v1  ;;  %v1720_v10 = vrot.slane %v1719_v58, 2 }
 0x502   :  { %v1732_v16 = vadd.f32 %v1731_v39, %v1730_v21  ;;  %v1750_v54 = vadd.f32 %v1749_v41, %v1748_v43  ;;  %v1767_v33 = vrot.slane %v1766_v53, 1  ;;  %v1784_v55 = vadd.f32 %v1783_v5, %v1782_v27 }
 0x503   :  { %v1650_v37 = vmul.f32 %v1618_v59, %v2965_v30  ;;  %v1798_v49 = vpack.c.bf16 %v1678_v63, %v1678_v63  ;;  %v1741_v0 = vadd.f32 %v1740_v9, %v1739_v14  ;;  %v1758_v36 = vrot.slane %v1757_v40, 1 }
 0x504   :  { %v1775_v42 = vadd.f32 %v1774_v15, %v1773_v23  ;;  %v1696_v47 = vadd.f32 %v1695_v2, %v1694_v38  ;;  %v1713_v57 = vrot.slane %v1712_v34, 1  ;;  %v1787_v19 = vsel %vm1651_vm5, %v1649_v51, 0.0 }
 0x505   :  { %v1788_v24 = vsel %vm1651_vm5, %v1650_v37, 0.0  ;;  %v1704_v7 = vrot.slane %v1703_v56, 1  ;;  %v1721_v48 = vadd.f32 %v1720_v10, %v1719_v58  ;;  %v1804_v29 = vpack.c.bf16 %v1732_v16, %v1732_v16 }
 0x506   :  { %v1789_v12 = vadd.f32 %v1788_v24, %v1787_v19  ;;  %v1839_v35 = vunpack.c.l.b16 %v1796_v52  ;;  %v1806_v4 = vpack.c.bf16 %v1750_v54, %v1750_v54  ;;  %v1768_v17 = vadd.f32 %v1767_v33, %v1766_v53  ;;  %v2076_v24 = vld [vmem:[%s3270_s10] ss:$0 sm:$0xff] }
 0x507   :  { %v1785_v30 = vrot.slane %v1784_v55, 1  ;;  %v1805_v31 = vpack.c.bf16 %v1741_v0, %v1741_v0  ;;  %v1759_v26 = vadd.f32 %v1758_v36, %v1757_v40  ;;  %v1776_v62 = vrot.slane %v1775_v42, 1 }
 0x508   :  { %v1790_v60 = vrot.slane %v1789_v12, 4  ;;  %v1799_v22 = vpack.c.bf16 %v1687_v50, %v1687_v50  ;;  %v1841_v3 = vunpack.c.l.b16 %v1798_v49  ;;  %v1800_v1 = vpack.c.bf16 %v1696_v47, %v1696_v47 }
 0x509   :  { %v1714_v11 = vadd.f32 %v1713_v57, %v1712_v34  ;;  %v1705_v21 = vadd.f32 %v1704_v7, %v1703_v56  ;;  %v1847_v44 = vunpack.c.l.b16 %v1804_v29  ;;  %v1722_v45 = vrot.slane %v1721_v48, 1 }
 0x50a   :  { %v1791_v20 = vadd.f32 %v1790_v60, %v1789_v12  ;;  %v1849_v43 = vunpack.c.l.b16 %v1806_v4  ;;  %v1808_v46 = vpack.c.bf16 %v1768_v17, %v1768_v17  ;;  %v1786_v14 = vadd.f32 %v1785_v30, %v1784_v55 }
 0x50b   :  { %v1856_v28 = vsel %vm1855_vm6, %v3227_v32, %v1839_v35  ;;  %v1848_v23 = vunpack.c.l.b16 %v1805_v31  ;;  %v1807_v27 = vpack.c.bf16 %v1759_v26, %v1759_v26  ;;  %v1777_v52 = vadd.f32 %v1776_v62, %v1775_v42 }
 0x50c   :  { %v1792_v38 = vrot.slane %v1791_v20, 2  ;;  %v1842_v61 = vunpack.c.l.b16 %v1799_v22  ;;  %v1843_v18 = vunpack.c.l.b16 %v1800_v1  ;;  %v1802_v8 = vpack.c.bf16 %v1714_v11, %v1714_v11 }
 0x50d   :  { %v1858_v13 = vsel %vm1857_vm7, %v1841_v3, %v1856_v28  ;;  %v1801_v25 = vpack.c.bf16 %v1705_v21, %v1705_v21  ;;  %v1723_v39 = vadd.f32 %v1722_v45, %v1721_v48  ;;  %v1869_v41 = vsel %vm1855_vm6, %v1848_v23, %v1847_v44 }
 0x50e   :  { %v1793_v58 = vadd.f32 %v1792_v38, %v1791_v20  ;;  %v1851_v53 = vunpack.c.l.b16 %v1808_v46  ;;  %v1810_v5 = vpack.c.bf16 %v1786_v14, %v1786_v14  ;;  %v1870_v6 = vsel %vm1857_vm7, %v1849_v43, %v1869_v41 }
 0x50f   :  { %v1850_v63 = vunpack.c.l.b16 %v1807_v27  ;;  %v1809_v32 = vpack.c.bf16 %v1777_v52, %v1777_v52  ;;  %v1860_v40 = vsel %vm1859_vm8, %v1842_v61, %v1858_v13  ;;  %v1845_v15 = vunpack.c.l.b16 %v1802_v8 }
 0x510   :  { %v1794_v9 = vrot.slane %v1793_v58, 1  ;;  %v1862_v2 = vsel %vm1861_vm9, %v1843_v18, %v1860_v40  ;;  %v1803_v51 = vpack.c.bf16 %v1723_v39, %v1723_v39  ;;  %v1844_v59 = vunpack.c.l.b16 %v1801_v25 }
 0x511   :  { %v1871_v50 = vsel %vm1859_vm8, %v1850_v63, %v1870_v6  ;;  %v1853_v56 = vunpack.c.l.b16 %v1810_v5  ;;  %v1852_v54 = vunpack.c.l.b16 %v1809_v32 }
 0x512   :  { %v1795_v34 = vadd.f32 %v1794_v9, %v1793_v58  ;;  %v1872_v10 = vsel %vm1861_vm9, %v1851_v53, %v1871_v50  ;;  %v1864_v33 = vsel %vm1863_vm10, %v1844_v59, %v1862_v2  ;;  %v1846_v37 = vunpack.c.l.b16 %v1803_v51 }
 0x513   :  { %v1866_v55 = vsel %vm1865_vm11, %v1845_v15, %v1864_v33  ;;  %v1873_v0 = vsel %vm1863_vm10, %v1852_v54, %v1872_v10 }
 0x514   :  { %v1811_v16 = vpack.c.bf16 %v1795_v34, %v1795_v34  ;;  %v1874_v36 = vsel %vm1865_vm11, %v1853_v56, %v1873_v0  ;;  %v1868_v42 = vsel %vm1867_vm12, %v1846_v37, %v1866_v55 }
 0x516   :  { %v1854_v49 = vunpack.c.l.b16 %v1811_v16 }
 0x518   :  { %v1875_v47 = vsel %vm1867_vm12, %v1854_v49, %v1874_v36 }
 0x519   :  { %v1876_v57 = vpack.c.b16 %v1875_v47, %v1868_v42 }
 0x51b   :  { %1877 = vrot.lane.b32.xlu0 %v1876_v57, %s2496_s9 }
 0x58d   :  { %v1878_v19 = vpop.permute.xlu0 %1877 }
 0x58e   :  { %2307 = vmatmul.mubr.msk.bf16.vlgmr.msra.gmra.mrb[64].mxu1 %vm464_vm2, %v1878_v19 }
 0x661   :  { %v1928_v7 = vpop.f32.mrb[64].mxu1 }
 0x662   :  { %v1929_v48 = vadd.f32 %v2076_v24, %v1928_v7  ;;  %v2308_v29 = vpop.f32.mrb[65].mxu1 }
 0x663   :  { %v1931_v12 = vpop.f32.mrb[66].mxu1 }
 0x664   :  { %1935 = vxpose.xlu1.b32.start [1/2] (short) (narrow) %v1929_v48, 8  ;;  %v2309_v35 = vpop.f32.mrb[67].mxu1  ;;  %v1932_v4 = vadd.f32 %v2076_v24, %v1931_v12 }
 0x668   :  { %1936 = vxpose.xlu1.b32.end [2/2] (short) (narrow) %v1932_v4, 8 }
 0x6e4   :  { %v1951_v17 = vpop.trf.xlu1 }
 0x6e5   :  { %1968 = vst.msk [vmem:[#allocation2] sm:$0xf] %vm1967_vm13, %v1951_v17 }
 0x6e6   :  { %2481 = shalt.err (!%p2478_p4)
}
 0x6e7   :  { %s2482_s17 = scalar_lea.hbm %s3271_s11, 64 }
 0x6e8   :  { %p2483_p5 = scmp.ne.s32.totalorder %s3271_s11, %s2482_s17  ;;  %p2486_p6 = scmp.lt.u32.totalorder %s2482_s17, %s3271_s11 }
 0x6ea   :  { %p2488_p7 = pnand %p2486_p6, %p2483_p5 }
 0x6ec   :  { %2491 = shalt.err (!%p2488_p7)
}
 0x6ed   :  { %1978 = dma.vmem_to_hbm [thread:$0]  %s1976_s14, 64, %s3271_s11, [#allocation3]  }
 0x6ee   :  { %2492 = dma.done.wait [#allocation3], 64  }
 0x6ef   :  { %2493 = vsyncadd [#allocation3], 4294967232 }
 0x6f0   :  { %1982 = vsyncpa [#allocation3], 1 }

</bundles_post_ra>
